<compile_context>
chip_gen: v6e
topology: v6e:2x2x1
jax: 0.10.0
libtpu: 0.0.40
codegen_flags: <defaults>
</compile_context>

<pallas_src>
import functools

import jax
import jax.numpy as jnp
from jax.experimental import pallas as pl
from jax.experimental.pallas import tpu as pltpu


def _convlstm_kernel(pT_ref, w_ref, b_ref, cprev_ref, h_ref, c_ref, *, hid):
    """One lane-tile of the fused ConvLSTM step.

    pT_ref:    (Kpad, Lt)    bf16  im2col patches (K-major), batch fused into lanes
    w_ref:     (4*hid, Kpad) bf16  flattened conv weight, gate order [i, f, o, g]
    b_ref:     (4*hid, 1)    f32   conv bias (added post-GEMM in f32)
    cprev_ref: (hid, Lt)     f32   previous cell state
    h_ref:     (hid, Lt)     f32   output hidden state
    c_ref:     (hid, Lt)     f32   output cell state
    """

    def gate_preact(g):
        # Per-gate MXU dot: (hid, Kpad) @ (Kpad, Lt) -> (hid, Lt), f32 accum.
        # Weight slices are sublane-aligned (hid % 8 == 0); bias broadcast over
        # lanes in f32.
        return (jnp.dot(w_ref[g * hid:(g + 1) * hid, :], pT_ref[...],
                        preferred_element_type=jnp.float32)
                + b_ref[g * hid:(g + 1) * hid, :])

    # Torch chunk order: 0=input, 1=remember(forget), 2=out, 3=cell.
    # Order chosen to keep at most ~two (hid, Lt) f32 tiles live at once.
    c_new = jax.nn.sigmoid(gate_preact(0)) * jnp.tanh(gate_preact(3))
    c_new = jax.nn.sigmoid(gate_preact(1)) * cprev_ref[...] + c_new
    h_new = jax.nn.sigmoid(gate_preact(2)) * jnp.tanh(c_new)

    c_ref[...] = c_new
    h_ref[...] = h_new


def conv_lstm_step(x, w, b, prev_state=None, *, lane_tiles=1):
    """ConvLSTM forward (one step), PyTorch layout.

    x: (B, Cin, H, W) NCHW
    w: (4*hidden, Cin + hidden, k, k) OIHW
    b: (4*hidden,)
    prev_state: optional (prev_hidden, prev_cell), each (B, hidden, H, W)
    lane_tiles: split the fused batch*spatial lane axis into this many
        "parallel" grid steps (1 = single invocation; 2 shards across v7x's
        two TensorCores or bounds VMEM for large images).
    returns (hidden, cell), each (B, hidden, H, W)
    """
    B, cin, H, W = x.shape
    co = w.shape[0]
    hid = co // 4
    k = w.shape[-1]
    assert k % 2 == 1, "ConvLSTM 'same' conv assumes odd kernel size"
    assert hid % 8 == 0, "gate slices must be sublane (8-row) aligned"
    pad = k // 2
    cin_tot = cin + hid

    if prev_state is None:
        prev_h = jnp.zeros((B, hid, H, W), x.dtype)
        prev_c = jnp.zeros((B, hid, H, W), x.dtype)
    else:
        prev_h, prev_c = prev_state

    # ---- plain-JAX glue: concat, spatial pad, im2col (K-major), lane fusion.
    # TODO(synk): for large H*W, move im2col in-kernel (DMA the padded image,
    # build rows with shifted pl.ds slices) to avoid the 9x-inflated patch
    # array in HBM; at 16x16 the HBM cost is negligible.
    stacked = jnp.concatenate([x, prev_h], axis=1)                 # (B, cin_tot, H, W)
    xp = jnp.pad(stacked, ((0, 0), (0, 0), (pad, pad), (pad, pad)))
    cols = [xp[:, :, ky:ky + H, kx:kx + W]                         # each (B, cin_tot, H, W)
            for ky in range(k) for kx in range(k)]
    # Row order (ci, ky, kx) matches w.reshape(co, cin_tot*k*k) column order.
    patchesT = jnp.stack(cols, axis=2).reshape(B, cin_tot * k * k, H * W)

    K = cin_tot * k * k
    M = H * W
    Kpad = ((K + 127) // 128) * 128
    Mpad = ((M + 127) // 128) * 128
    L = B * Mpad                         # batch fused into the lane axis
    assert L % (128 * lane_tiles) == 0
    Lt = L // lane_tiles

    patchesT = jnp.pad(patchesT, ((0, 0), (0, Kpad - K), (0, Mpad - M)))
    # (B, Kpad, Mpad) -> (Kpad, B*Mpad): lane-dense, every batch segment 128-aligned.
    patchesT = jnp.transpose(patchesT, (1, 0, 2)).reshape(Kpad, L)
    patchesT = patchesT.astype(jnp.bfloat16)

    w2d = w.reshape(co, K)
    w2d = jnp.pad(w2d, ((0, 0), (0, Kpad - K))).astype(jnp.bfloat16)
    b2d = b.reshape(co, 1).astype(jnp.float32)                      # f32 post-GEMM bias

    cprevT = prev_c.reshape(B, hid, M).astype(jnp.float32)
    cprevT = jnp.pad(cprevT, ((0, 0), (0, 0), (0, Mpad - M)))
    cprevT = jnp.transpose(cprevT, (1, 0, 2)).reshape(hid, L)

    kernel = functools.partial(_convlstm_kernel, hid=hid)

    h, c = pl.pallas_call(
        kernel,
        out_shape=(jax.ShapeDtypeStruct((hid, L), jnp.float32),
                   jax.ShapeDtypeStruct((hid, L), jnp.float32)),
        grid_spec=pltpu.PrefetchScalarGridSpec(
            num_scalar_prefetch=0,
            grid=(lane_tiles,),
            in_specs=[
                pl.BlockSpec((Kpad, Lt), lambda i: (0, i)),
                pl.BlockSpec((co, Kpad), lambda i: (0, 0)),
                pl.BlockSpec((co, 1), lambda i: (0, 0)),
                pl.BlockSpec((hid, Lt), lambda i: (0, i)),
            ],
            out_specs=[
                pl.BlockSpec((hid, Lt), lambda i: (0, i)),
                pl.BlockSpec((hid, Lt), lambda i: (0, i)),
            ],
        ),
        compiler_params=pltpu.CompilerParams(
            dimension_semantics=("parallel",)),
    )(patchesT, w2d, b2d, cprevT)

    def unfuse(t):
        t = t.reshape(hid, B, Mpad)[:, :, :M]
        return jnp.transpose(t, (1, 0, 2)).reshape(B, hid, H, W).astype(x.dtype)

    # TODO(synk): for T-step rollouts, fuse the time loop into one pallas_call
    # (T grid axis "arbitrary", h/c resident in VMEM scratch) to avoid per-step
    # launch + HBM round trips of the state.
    return unfuse(h), unfuse(c)


def conv_lstm_ref(x, w, b, prev_state=None):
    """Pure-JAX reference (mirrors the PyTorch module, NCHW/OIHW, f32)."""
    B, cin, H, W = x.shape
    hid = w.shape[0] // 4
    pad = w.shape[-1] // 2
    if prev_state is None:
        prev_h = jnp.zeros((B, hid, H, W), x.dtype)
        prev_c = jnp.zeros((B, hid, H, W), x.dtype)
    else:
        prev_h, prev_c = prev_state
    stacked = jnp.concatenate([x, prev_h], axis=1)
    gates = jax.lax.conv_general_dilated(
        stacked, w, window_strides=(1, 1),
        padding=[(pad, pad), (pad, pad)],
        dimension_numbers=("NCHW", "OIHW", "NCHW")) + b.reshape(1, -1, 1, 1)
    i_g, f_g, o_g, g_g = jnp.split(gates, 4, axis=1)
    c = jax.nn.sigmoid(f_g) * prev_c + jax.nn.sigmoid(i_g) * jnp.tanh(g_g)
    h = jax.nn.sigmoid(o_g) * jnp.tanh(c)
    return h, c


if __name__ == "__main__":
    # ConvLSTM(input_size=4, hidden_size=32, kernel_size=3) on (2, 4, 16, 16).
    B, Cin, H, W = 2, 4, 16, 16
    hid, ksz = 32, 3

    key = jax.random.PRNGKey(0)
    k1, k2, k3 = jax.random.split(key, 3)
    x = jax.random.normal(k1, (B, Cin, H, W), jnp.float32)

    # Deterministic parameter init (PyTorch-style uniform bounds).
    fan_in = (Cin + hid) * ksz * ksz
    bound = 1.0 / (fan_in ** 0.5)
    w = jax.random.uniform(k2, (4 * hid, Cin + hid, ksz, ksz),
                           jnp.float32, -bound, bound)
    b = jax.random.uniform(k3, (4 * hid,), jnp.float32, -bound, bound)

    # Step 1 (prev_state=None) and step 2 (recurrent state fed back).
    h1, c1 = conv_lstm_step(x, w, b)
    h2, c2 = conv_lstm_step(x, w, b, (h1, c1))
    jax.block_until_ready((h1, c1, h2, c2))

    h1r, c1r = conv_lstm_ref(x, w, b)
    h2r, c2r = conv_lstm_ref(x, w, b, (h1r, c1r))

    assert h1.shape == (B, hid, H, W) and c1.shape == (B, hid, H, W)
    # bf16 MXU inputs (f32 accumulation, f32 bias) vs f32 reference.
    tol = dict(atol=1e-2, rtol=1e-2)
    assert jnp.allclose(h1, h1r, **tol), float(jnp.max(jnp.abs(h1 - h1r)))
    assert jnp.allclose(c1, c1r, **tol), float(jnp.max(jnp.abs(c1 - c1r)))
    assert jnp.allclose(h2, h2r, **tol), float(jnp.max(jnp.abs(h2 - h2r)))
    assert jnp.allclose(c2, c2r, **tol), float(jnp.max(jnp.abs(c2 - c2r)))

    print("KERNEL_OK")
</pallas_src>

<mosaic_0001>
module attributes {stable_mosaic.version = 11 : i64} {
  func.func @_convlstm_kernel(%arg0: i32, %arg1: memref<384x512xbf16, #tpu.memory_space<vmem>>, %arg2: memref<128x384xbf16, #tpu.memory_space<vmem>>, %arg3: memref<128x1xf32, #tpu.memory_space<vmem>>, %arg4: memref<32x512xf32, #tpu.memory_space<vmem>>, %arg5: memref<32x512xf32, #tpu.memory_space<vmem>>, %arg6: memref<32x512xf32, #tpu.memory_space<vmem>>) attributes {dimension_semantics = [#tpu.dimension_semantics<parallel>], iteration_bounds = array<i64: 1>, scalar_prefetch = 0 : i64, scratch_operands = 0 : i64, tpu.core_type = #tpu.core_type<tc>, window_params = [{transform_indices = @transform_0, window_bounds = array<i64: 384, 512>}, {pipeline_mode = #tpu.pipeline_mode<synchronous>, transform_indices = @transform_1, window_bounds = array<i64: 128, 384>}, {pipeline_mode = #tpu.pipeline_mode<synchronous>, transform_indices = @transform_2, window_bounds = array<i64: 128, 1>}, {transform_indices = @transform_3, window_bounds = array<i64: 32, 512>}, {transform_indices = @transform_4, window_bounds = array<i64: 32, 512>}, {transform_indices = @transform_5, window_bounds = array<i64: 32, 512>}]} {
    %c0 = arith.constant 0 : index
    %c0_0 = arith.constant 0 : index
    %0 = vector.load %arg2[%c0, %c0_0] : memref<128x384xbf16, #tpu.memory_space<vmem>>, vector<32x384xbf16>
    %c0_1 = arith.constant 0 : index
    %c0_2 = arith.constant 0 : index
    %1 = vector.load %arg1[%c0_1, %c0_2] : memref<384x512xbf16, #tpu.memory_space<vmem>>, vector<384x512xbf16>
    %cst = arith.constant dense<0.000000e+00> : vector<32x512xf32>
    %2 = tpu.matmul %0, %1, %cst {dimension_numbers = #tpu.dot_dimension_numbers<[1], [0], [0], [1], [0, 0, 1, 1], [], []>} : vector<32x384xbf16>, vector<384x512xbf16>, vector<32x512xf32> -> vector<32x512xf32>
    %c0_3 = arith.constant 0 : index
    %c0_4 = arith.constant 0 : index
    %3 = vector.load %arg3[%c0_3, %c0_4] : memref<128x1xf32, #tpu.memory_space<vmem>>, vector<32x1xf32>
    %4 = vector.broadcast %3 : vector<32x1xf32> to vector<32x512xf32>
    %5 = arith.addf %2, %4 : vector<32x512xf32>
    %6 = arith.negf %5 : vector<32x512xf32>
    %7 = math.exp %6 : vector<32x512xf32>
    %cst_5 = arith.constant 1.000000e+00 : f32
    %8 = vector.broadcast %cst_5 : f32 to vector<32x512xf32>
    %9 = arith.addf %8, %7 : vector<32x512xf32>
    %10 = arith.divf %8, %9 : vector<32x512xf32>
    %c96 = arith.constant 96 : index
    %c0_6 = arith.constant 0 : index
    %11 = vector.load %arg2[%c96, %c0_6] : memref<128x384xbf16, #tpu.memory_space<vmem>>, vector<32x384xbf16>
    %c0_7 = arith.constant 0 : index
    %c0_8 = arith.constant 0 : index
    %12 = vector.load %arg1[%c0_7, %c0_8] : memref<384x512xbf16, #tpu.memory_space<vmem>>, vector<384x512xbf16>
    %cst_9 = arith.constant dense<0.000000e+00> : vector<32x512xf32>
    %13 = tpu.matmul %11, %12, %cst_9 {dimension_numbers = #tpu.dot_dimension_numbers<[1], [0], [0], [1], [0, 0, 1, 1], [], []>} : vector<32x384xbf16>, vector<384x512xbf16>, vector<32x512xf32> -> vector<32x512xf32>
    %c96_10 = arith.constant 96 : index
    %c0_11 = arith.constant 0 : index
    %14 = vector.load %arg3[%c96_10, %c0_11] : memref<128x1xf32, #tpu.memory_space<vmem>>, vector<32x1xf32>
    %15 = vector.broadcast %14 : vector<32x1xf32> to vector<32x512xf32>
    %16 = arith.addf %13, %15 : vector<32x512xf32>
    %17 = math.tanh %16 : vector<32x512xf32>
    %18 = arith.mulf %10, %17 : vector<32x512xf32>
    %c32 = arith.constant 32 : index
    %c0_12 = arith.constant 0 : index
    %19 = vector.load %arg2[%c32, %c0_12] : memref<128x384xbf16, #tpu.memory_space<vmem>>, vector<32x384xbf16>
    %c0_13 = arith.constant 0 : index
    %c0_14 = arith.constant 0 : index
    %20 = vector.load %arg1[%c0_13, %c0_14] : memref<384x512xbf16, #tpu.memory_space<vmem>>, vector<384x512xbf16>
    %cst_15 = arith.constant dense<0.000000e+00> : vector<32x512xf32>
    %21 = tpu.matmul %19, %20, %cst_15 {dimension_numbers = #tpu.dot_dimension_numbers<[1], [0], [0], [1], [0, 0, 1, 1], [], []>} : vector<32x384xbf16>, vector<384x512xbf16>, vector<32x512xf32> -> vector<32x512xf32>
    %c32_16 = arith.constant 32 : index
    %c0_17 = arith.constant 0 : index
    %22 = vector.load %arg3[%c32_16, %c0_17] : memref<128x1xf32, #tpu.memory_space<vmem>>, vector<32x1xf32>
    %23 = vector.broadcast %22 : vector<32x1xf32> to vector<32x512xf32>
    %24 = arith.addf %21, %23 : vector<32x512xf32>
    %25 = arith.negf %24 : vector<32x512xf32>
    %26 = math.exp %25 : vector<32x512xf32>
    %cst_18 = arith.constant 1.000000e+00 : f32
    %27 = vector.broadcast %cst_18 : f32 to vector<32x512xf32>
    %28 = arith.addf %27, %26 : vector<32x512xf32>
    %29 = arith.divf %27, %28 : vector<32x512xf32>
    %c0_19 = arith.constant 0 : index
    %c0_20 = arith.constant 0 : index
    %30 = vector.load %arg4[%c0_19, %c0_20] : memref<32x512xf32, #tpu.memory_space<vmem>>, vector<32x512xf32>
    %31 = arith.mulf %29, %30 : vector<32x512xf32>
    %32 = arith.addf %31, %18 : vector<32x512xf32>
    %c64 = arith.constant 64 : index
    %c0_21 = arith.constant 0 : index
    %33 = vector.load %arg2[%c64, %c0_21] : memref<128x384xbf16, #tpu.memory_space<vmem>>, vector<32x384xbf16>
    %c0_22 = arith.constant 0 : index
    %c0_23 = arith.constant 0 : index
    %34 = vector.load %arg1[%c0_22, %c0_23] : memref<384x512xbf16, #tpu.memory_space<vmem>>, vector<384x512xbf16>
    %cst_24 = arith.constant dense<0.000000e+00> : vector<32x512xf32>
    %35 = tpu.matmul %33, %34, %cst_24 {dimension_numbers = #tpu.dot_dimension_numbers<[1], [0], [0], [1], [0, 0, 1, 1], [], []>} : vector<32x384xbf16>, vector<384x512xbf16>, vector<32x512xf32> -> vector<32x512xf32>
    %c64_25 = arith.constant 64 : index
    %c0_26 = arith.constant 0 : index
    %36 = vector.load %arg3[%c64_25, %c0_26] : memref<128x1xf32, #tpu.memory_space<vmem>>, vector<32x1xf32>
    %37 = vector.broadcast %36 : vector<32x1xf32> to vector<32x512xf32>
    %38 = arith.addf %35, %37 : vector<32x512xf32>
    %39 = arith.negf %38 : vector<32x512xf32>
    %40 = math.exp %39 : vector<32x512xf32>
    %cst_27 = arith.constant 1.000000e+00 : f32
    %41 = vector.broadcast %cst_27 : f32 to vector<32x512xf32>
    %42 = arith.addf %41, %40 : vector<32x512xf32>
    %43 = arith.divf %41, %42 : vector<32x512xf32>
    %44 = math.tanh %32 : vector<32x512xf32>
    %45 = arith.mulf %43, %44 : vector<32x512xf32>
    %c0_28 = arith.constant 0 : index
    %c0_29 = arith.constant 0 : index
    %46 = vector.load %arg6[%c0_28, %c0_29] : memref<32x512xf32, #tpu.memory_space<vmem>>, vector<32x512xf32>
    tpu.vector_store %arg6[%c0_28, %c0_29], %32 {strides = array<i32>} : memref<32x512xf32, #tpu.memory_space<vmem>>, vector<32x512xf32>,
    %c0_30 = arith.constant 0 : index
    %c0_31 = arith.constant 0 : index
    %47 = vector.load %arg5[%c0_30, %c0_31] : memref<32x512xf32, #tpu.memory_space<vmem>>, vector<32x512xf32>
    tpu.vector_store %arg5[%c0_30, %c0_31], %45 {strides = array<i32>} : memref<32x512xf32, #tpu.memory_space<vmem>>, vector<32x512xf32>,
    return
  }
  func.func @transform_0(%arg0: i32) -> (i32, i32) {
    %c0_i32 = arith.constant 0 : i32
    %c0_i32_0 = arith.constant 0 : i32
    return %c0_i32, %arg0 : i32, i32
  }
  func.func @transform_1(%arg0: i32) -> (i32, i32) {
    %c0_i32 = arith.constant 0 : i32
    %c0_i32_0 = arith.constant 0 : i32
    %c0_i32_1 = arith.constant 0 : i32
    return %c0_i32, %c0_i32_0 : i32, i32
  }
  func.func @transform_2(%arg0: i32) -> (i32, i32) {
    %c0_i32 = arith.constant 0 : i32
    %c0_i32_0 = arith.constant 0 : i32
    %c0_i32_1 = arith.constant 0 : i32
    return %c0_i32, %c0_i32_0 : i32, i32
  }
  func.func @transform_3(%arg0: i32) -> (i32, i32) {
    %c0_i32 = arith.constant 0 : i32
    %c0_i32_0 = arith.constant 0 : i32
    return %c0_i32, %arg0 : i32, i32
  }
  func.func @transform_4(%arg0: i32) -> (i32, i32) {
    %c0_i32 = arith.constant 0 : i32
    %c0_i32_0 = arith.constant 0 : i32
    return %c0_i32, %arg0 : i32, i32
  }
  func.func @transform_5(%arg0: i32) -> (i32, i32) {
    %c0_i32 = arith.constant 0 : i32
    %c0_i32_0 = arith.constant 0 : i32
    return %c0_i32, %arg0 : i32, i32
  }
}

</mosaic_0001>

<bundles_post_ra>
// kernel: tpu_custom_call.1
= control target key start
LH: loop header
LB: loop body
LE: loop exit
PB: predicated region body
PF: predicated region fallthrough
CT: control target
= control target key end

     0   :  { %11 = vsyncpa [#allocation3], 0  ;;  %s4019_s0 = inlined_call_operand.hbm [shape: bf16[384,512], index: 0, kind: input, shape index: {}]   ;;  %s4020_s1 = inlined_call_operand.hbm [shape: bf16[128,384], index: 1, kind: input, shape index: {}]   ;;  %s4021_s2 = inlined_call_operand.vmem [shape: f32[128,1], index: 2, kind: input, shape index: {}]   ;;  %s4022_s3 = inlined_call_operand.vmem [shape: f32[32,512], index: 3, kind: input, shape index: {}]   ;;  %s4023_s4 = inlined_call_operand.hbm [shape: f32[32,512], index: 4, kind: output, shape index: {0}]   ;;  %s4024_s5 = inlined_call_operand.hbm [shape: f32[32,512], index: 5, kind: output, shape index: {1}]  }
   0x1   :  { %12 = vsyncpa [#allocation6], 0 }
   0x2   :  { %13 = vsyncpa [#allocation4], 0 }
   0x3   :  { %14 = vsyncpa [#allocation9], 0  ;;  %s2968_s18 = smov [#allocation2]  }
   0x4   :  { %s20_s19 = sshll.u32 %s2968_s18, 4  ;;  %s21_s19 = int_to_ptr.vmem [resolvable:$true] %s20_s19 }
   0x5   :  { %s2888_s20 = scalar_lea.vmem %s21_s19, 12288  ;;  %p2893_p1 = scmp.lt.s32.totalorder %s21_s19, %s21_s19 }
   0x6   :  { %p2889_p0 = scmp.ne.s32.totalorder %s21_s19, %s2888_s20  ;;  %p2894_p2 = scmp.lt.s32.totalorder %s2888_s20, %s2888_s20 }
   0x8   :  { %p2895_p3 = por %p2894_p2, %p2893_p1 }
   0xa   :  { %p2896_p4 = pnand %p2895_p3, %p2889_p0 }
   0xc   :  { %2899 = shalt.err (!%p2896_p4)
}
   0xd   :  { %s2969_s21 = smov 256   ;;  %s2970_s22 = smov 16  }
   0xe   :  { %26 = dma.hbm_to_vmem [thread:$0]  %s4019_s0, 12288, %s21_s19, [#allocation3], %s2969_s21, %s2969_s21, %s2970_s22  }
   0xf   :  { %s2971_s25 = smov [#allocation5]  }
  0x10   :  { %s32_s26 = sshll.u32 %s2971_s25, 4  ;;  %s33_s26 = int_to_ptr.vmem [resolvable:$true] %s32_s26 }
  0x11   :  { %s2908_s27 = scalar_lea.vmem %s33_s26, 3072  ;;  %p2913_p6 = scmp.lt.s32.totalorder %s33_s26, %s33_s26 }
  0x12   :  { %p2909_p5 = scmp.ne.s32.totalorder %s33_s26, %s2908_s27  ;;  %p2914_p7 = scmp.lt.s32.totalorder %s2908_s27, %s2908_s27 }
  0x14   :  { %p2915_p8 = por %p2914_p7, %p2913_p6 }
  0x16   :  { %p2916_p9 = pnand %p2915_p8, %p2909_p5 }
  0x18   :  { %2919 = shalt.err (!%p2916_p9)
}
  0x19   :  { %s2972_s28 = smov 192   ;;  %s2973_s29 = smov 12  }
  0x1a   :  { %38 = dma.hbm_to_vmem [thread:$0]  %s4020_s1, 3072, %s33_s26, [#allocation6], %s2972_s28, %s2972_s28, %s2973_s29  }
  0x1b   :  { %2960 = dma.done.wait [#allocation3], 12288  }
  0x1c   :  { %2961 = vsyncadd [#allocation3], 4294955008 }
  0x1d   :  { %2962 = dma.done.wait [#allocation6], 3072  }
  0x1e   :  { %2963 = vsyncadd [#allocation6], 4294964224  ;;  %v4025_v0 = vmov 0   ;;  %v3018_v1 = vld [vmem:[#allocation2 + $0xe4] ss:$16 sps:$4 sm:$0xff]   ;;  %s2975_s13 = smov [#allocation8]  }
  0x1f   :  { %775 = vmatprep.mubr.bf16.mxu1 %v4025_v0  ;;  %2375 = vset.pattern.permute.xlu0 %v4025_v0  ;;  %v3020_v2 = vld [vmem:[#allocation2 + $0x2e4] ss:$16 sps:$4 sm:$0xff]   ;;  %v3023_v3 = vld [vmem:[#allocation2 + $0xe0] ss:$16 sps:$4 sm:$0xff]   ;;  %v3114_v34 = vld [vmem:[#allocation2 + $0xec] ss:$16 sps:$4 sm:$0xff]  }
  0x20   :  { %2376 = vset.pattern.permute.xlu1 %v4025_v0  ;;  %690 = vmatprep.subr.bf16.mxu0 %v3018_v1  ;;  %v3025_v4 = vld [vmem:[#allocation2 + $0x2e0] ss:$16 sps:$4 sm:$0xff]   ;;  %v3028_v5 = vld [vmem:[#allocation2 + $0xc4] ss:$16 sps:$4 sm:$0xff]   ;;  %v3122_v37 = vld [vmem:[#allocation2 + $0xe8] ss:$16 sps:$4 sm:$0xff]  }
  0x21   :  { %743 = vmatprep.subr.bf16.mxu1 %v3020_v2  ;;  %691 = vmatpush1.bf16.msra.mxu0 %v3023_v3  ;;  %v3032_v6 = vld [vmem:[#allocation2 + $0x2c4] ss:$16 sps:$4 sm:$0xff]   ;;  %v3034_v7 = vld [vmem:[#allocation2 + $0xc0] ss:$16 sps:$4 sm:$0xff]   ;;  %v3128_v39 = vld [vmem:[#allocation2 + $0xcc] ss:$16 sps:$4 sm:$0xff]  }
  0x22   :  { %744 = vmatpush1.bf16.msra.mxu1 %v3025_v4  ;;  %692 = vmatprep.subr.bf16.mxu0 %v3028_v5  ;;  %v3037_v8 = vld [vmem:[#allocation2 + $0x2c0] ss:$16 sps:$4 sm:$0xff]   ;;  %v3040_v9 = vld [vmem:[#allocation2 + $0xa4] ss:$16 sps:$4 sm:$0xff]   ;;  %v3135_v41 = vld [vmem:[#allocation2 + $0xc8] ss:$16 sps:$4 sm:$0xff]  }
  0x23   :  { %745 = vmatprep.subr.bf16.mxu1 %v3032_v6  ;;  %v3042_v10 = vld [vmem:[#allocation2 + $0x2a4] ss:$16 sps:$4 sm:$0xff]   ;;  %v3044_v11 = vld [vmem:[#allocation2 + $0xa0] ss:$16 sps:$4 sm:$0xff]   ;;  %v3141_v43 = vld [vmem:[#allocation2 + $0xac] ss:$16 sps:$4 sm:$0xff]  }
  0x24   :  { %v3046_v12 = vld [vmem:[#allocation2 + $0x2a0] ss:$16 sps:$4 sm:$0xff]   ;;  %v3050_v13 = vld [vmem:[#allocation2 + $0x84] ss:$16 sps:$4 sm:$0xff]   ;;  %4119 = vst [vmem:[#allocation15_spill] sm:$0xff] %v3141_v43  ;;  %s2179_s14 = sshll.u32 %s2975_s13, 4  ;;  %s2180_s14 = int_to_ptr.vmem [resolvable:$true] %s2179_s14 }
  0x25   :  { %693 = vmatpush1.bf16.msra.mxu0 %v3034_v7  ;;  %v3054_v14 = vld [vmem:[#allocation2 + $0x284] ss:$16 sps:$4 sm:$0xff]   ;;  %v3056_v15 = vld [vmem:[#allocation2 + $0x80] ss:$16 sps:$4 sm:$0xff]   ;;  %v3148_v45 = vld [vmem:[#allocation2 + $0xa8] ss:$16 sps:$4 sm:$0xff]   ;;  %p2925_p11 = scmp.lt.s32.totalorder %s2180_s14, %s2180_s14 }
  0x26   :  { %746 = vmatpush1.bf16.msra.mxu1 %v3037_v8  ;;  %694 = vmatprep.subr.bf16.mxu0 %v3040_v9  ;;  %v3060_v16 = vld [vmem:[#allocation2 + $0x280] ss:$16 sps:$4 sm:$0xff]   ;;  %v3062_v17 = vld [vmem:[#allocation2 + $0x64] ss:$16 sps:$4 sm:$0xff]   ;;  %4121 = vst [vmem:[#allocation17_spill] sm:$0xff] %v3148_v45 }
  0x27   :  { %747 = vmatprep.subr.bf16.mxu1 %v3042_v10  ;;  %v3066_v18 = vld [vmem:[#allocation2 + $0x264] ss:$16 sps:$4 sm:$0xff]   ;;  %v3068_v19 = vld [vmem:[#allocation2 + $0x60] ss:$16 sps:$4 sm:$0xff]   ;;  %v3154_v47 = vld [vmem:[#allocation2 + $0x8c] ss:$16 sps:$4 sm:$0xff]  }
  0x28   :  { %v3070_v20 = vld [vmem:[#allocation2 + $0x260] ss:$16 sps:$4 sm:$0xff]   ;;  %v3074_v21 = vld [vmem:[#allocation2 + $0x44] ss:$16 sps:$4 sm:$0xff]   ;;  %4123 = vst [vmem:[#allocation19_spill] sm:$0xff] %v3154_v47 }
  0x29   :  { %695 = vmatpush1.bf16.msra.mxu0 %v3044_v11  ;;  %v3078_v22 = vld [vmem:[#allocation2 + $0x244] ss:$16 sps:$4 sm:$0xff]   ;;  %v3080_v23 = vld [vmem:[#allocation2 + $0x40] ss:$16 sps:$4 sm:$0xff]   ;;  %v3158_v49 = vld [vmem:[#allocation2 + $0x88] ss:$16 sps:$4 sm:$0xff]  }
  0x2a   :  { %748 = vmatpush1.bf16.msra.mxu1 %v3046_v12  ;;  %696 = vmatprep.subr.bf16.mxu0 %v3050_v13  ;;  %v3084_v24 = vld [vmem:[#allocation2 + $0x240] ss:$16 sps:$4 sm:$0xff]   ;;  %v3086_v25 = vld [vmem:[#allocation2 + $0x24] ss:$16 sps:$4 sm:$0xff]   ;;  %4125 = vst [vmem:[#allocation21_spill] sm:$0xff] %v3158_v49 }
  0x2b   :  { %749 = vmatprep.subr.bf16.mxu1 %v3054_v14  ;;  %v3090_v26 = vld [vmem:[#allocation2 + $0x224] ss:$16 sps:$4 sm:$0xff]   ;;  %v3094_v27 = vld [vmem:[#allocation2 + $0x20] ss:$16 sps:$4 sm:$0xff]   ;;  %v3166_v52 = vld [vmem:[#allocation2 + $0x6c] ss:$16 sps:$4 sm:$0xff]  }
  0x2c   :  { %v3096_v28 = vld [vmem:[#allocation2 + $0x220] ss:$16 sps:$4 sm:$0xff]   ;;  %v3098_v29 = vld [vmem:[#allocation2 + $0x4] ss:$16 sps:$4 sm:$0xff]   ;;  %4127 = vst [vmem:[#allocation23_spill] sm:$0xff] %v3166_v52 }
  0x2d   :  { %697 = vmatpush1.bf16.msra.mxu0 %v3056_v15  ;;  %v3102_v30 = vld [vmem:[#allocation2 + $0x204] ss:$16 sps:$4 sm:$0xff]   ;;  %v3104_v31 = vld [vmem:[#allocation2] ss:$16 sps:$4 sm:$0xff]   ;;  %v3172_v54 = vld [vmem:[#allocation2 + $0x68] ss:$16 sps:$4 sm:$0xff]  }
  0x2e   :  { %750 = vmatpush1.bf16.msra.mxu1 %v3060_v16  ;;  %698 = vmatprep.subr.bf16.mxu0 %v3062_v17  ;;  %v3108_v32 = vld [vmem:[#allocation2 + $0x200] ss:$16 sps:$4 sm:$0xff]   ;;  %v3112_v33 = vld [vmem:[#allocation2 + $0x1e4] ss:$16 sps:$4 sm:$0xff]   ;;  %4129 = vst [vmem:[#allocation25_spill] sm:$0xff] %v3172_v54 }
  0x2f   :  { %751 = vmatprep.subr.bf16.mxu1 %v3066_v18  ;;  %v3116_v35 = vld [vmem:[#allocation5 + $0x8] ss:$12 sps:$4 sm:$0xff]   ;;  %v3120_v36 = vld [vmem:[#allocation2 + $0x1e0] ss:$16 sps:$4 sm:$0xff]   ;;  %v3178_v56 = vld [vmem:[#allocation2 + $0x4c] ss:$16 sps:$4 sm:$0xff]  }
  0x30   :  { %v3124_v38 = vld [vmem:[#allocation2 + $0x1c4] ss:$16 sps:$4 sm:$0xff]   ;;  %v3131_v40 = vld [vmem:[#allocation2 + $0x1c0] ss:$16 sps:$4 sm:$0xff]   ;;  %4131 = vst [vmem:[#allocation27_spill] sm:$0xff] %v3178_v56 }
  0x31   :  { %699 = vmatpush1.bf16.msra.mxu0 %v3068_v19  ;;  %v3139_v42 = vld [vmem:[#allocation2 + $0x1a4] ss:$16 sps:$4 sm:$0xff]   ;;  %v3146_v44 = vld [vmem:[#allocation2 + $0x1a0] ss:$16 sps:$4 sm:$0xff]   ;;  %v3184_v58 = vld [vmem:[#allocation2 + $0x48] ss:$16 sps:$4 sm:$0xff]  }
  0x32   :  { %752 = vmatpush1.bf16.msra.mxu1 %v3070_v20  ;;  %700 = vmatprep.subr.bf16.mxu0 %v3074_v21  ;;  %4118 = vst [vmem:[#allocation14_spill] sm:$0xff] %v3139_v42  ;;  %4120 = vst [vmem:[#allocation16_spill] sm:$0xff] %v3146_v44  ;;  %v3150_v46 = vld [vmem:[#allocation2 + $0x184] ss:$16 sps:$4 sm:$0xff]   ;;  %v3156_v48 = vld [vmem:[#allocation2 + $0x180] ss:$16 sps:$4 sm:$0xff]  }
  0x33   :  { %753 = vmatprep.subr.bf16.mxu1 %v3078_v22  ;;  %4122 = vst [vmem:[#allocation18_spill] sm:$0xff] %v3150_v46  ;;  %4124 = vst [vmem:[#allocation20_spill] sm:$0xff] %v3156_v48  ;;  %v3162_v50 = vld [vmem:[#allocation2 + $0x164] ss:$16 sps:$4 sm:$0xff]   ;;  %v3168_v53 = vld [vmem:[#allocation2 + $0x160] ss:$16 sps:$4 sm:$0xff]  }
  0x34   :  { %4126 = vst [vmem:[#allocation22_spill] sm:$0xff] %v3162_v50  ;;  %v2476_v51 = vld [vmem:[#allocation5 + $0x4] ss:$12 sps:$4 sm:$0xff]   ;;  %4128 = vst [vmem:[#allocation24_spill] sm:$0xff] %v3168_v53  ;;  %v3190_v60 = vld [vmem:[#allocation2 + $0x2c] ss:$16 sps:$4 sm:$0xff]  }
  0x35   :  { %701 = vmatpush1.bf16.msra.mxu0 %v3080_v23  ;;  %722 = vmatprep.mubr.bf16.mxu0 %v2476_v51  ;;  %v3176_v55 = vld [vmem:[#allocation2 + $0x144] ss:$16 sps:$4 sm:$0xff]   ;;  %v3182_v57 = vld [vmem:[#allocation2 + $0x140] ss:$16 sps:$4 sm:$0xff]   ;;  %4133 = vst [vmem:[#allocation29_spill] sm:$0xff] %v3184_v58  ;;  %4135 = vst [vmem:[#allocation31_spill] sm:$0xff] %v3190_v60 }
  0x36   :  { %754 = vmatpush1.bf16.msra.mxu1 %v3084_v24  ;;  %702 = vmatprep.subr.bf16.mxu0 %v3086_v25  ;;  %4130 = vst [vmem:[#allocation26_spill] sm:$0xff] %v3176_v55  ;;  %4132 = vst [vmem:[#allocation28_spill] sm:$0xff] %v3182_v57  ;;  %v3186_v59 = vld [vmem:[#allocation2 + $0x124] ss:$16 sps:$4 sm:$0xff]   ;;  %v3192_v61 = vld [vmem:[#allocation2 + $0x120] ss:$16 sps:$4 sm:$0xff]  }
  0x37   :  { %755 = vmatprep.subr.bf16.mxu1 %v3090_v26  ;;  %4134 = vst [vmem:[#allocation30_spill] sm:$0xff] %v3186_v59  ;;  %4136 = vst [vmem:[#allocation32_spill] sm:$0xff] %v3192_v61  ;;  %v3194_v62 = vld [vmem:[#allocation2 + $0x28] ss:$16 sps:$4 sm:$0xff]   ;;  %v3198_v63 = vld [vmem:[#allocation2 + $0x104] ss:$16 sps:$4 sm:$0xff]  }
  0x38   :  { %4137 = vst [vmem:[#allocation33_spill] sm:$0xff] %v3194_v62  ;;  %4138 = vst [vmem:[#allocation34_spill] sm:$0xff] %v3198_v63 }
  0x39   :  { %703 = vmatpush1.bf16.msra.mxu0 %v3094_v27 }
  0x3a   :  { %756 = vmatpush1.bf16.msra.mxu1 %v3096_v28  ;;  %704 = vmatprep.subr.bf16.mxu0 %v3098_v29 }
  0x3b   :  { %757 = vmatprep.subr.bf16.mxu1 %v3102_v30 }
  0x3d   :  { %705 = vmatpush1.bf16.msra.mxu0 %v3104_v31 }
  0x3e   :  { %758 = vmatpush1.bf16.msra.mxu1 %v3108_v32  ;;  %706 = vmatprep.subr.bf16.mxu0 %v3112_v33 }
  0x3f   :  { %796 = vmatprep.subr.bf16.mxu1 %v3114_v34 }
  0x41   :  { %776 = vmatmul.mubr.bf16.vlgmr.msra.gmra.mxu1 %v3116_v35  ;;  %707 = vmatpush2.bf16.msra.mxu0 %v3120_v36 }
  0x42   :  { %797 = vmatpush1.bf16.msra.mxu1 %v3122_v37  ;;  %708 = vmatprep.subr.bf16.mxu0 %v3124_v38 }
  0x43   :  { %798 = vmatprep.subr.bf16.mxu1 %v3128_v39  ;;  %785 = vmatprep.mubr.bf16.mxu1 %v4025_v0  ;;  %v3202_v0 = vld [vmem:[#allocation2 + $0xc] ss:$16 sps:$4 sm:$0xff]  }
  0x44   :  { %4139 = vst [vmem:[#allocation35_spill] sm:$0xff] %v3202_v0 }
  0x45   :  { %709 = vmatpush2.bf16.msra.mxu0 %v3131_v40 }
  0x46   :  { %799 = vmatpush1.bf16.msra.mxu1 %v3135_v41  ;;  %710 = vmatprep.subr.bf16.mxu0 %v3139_v42 }
  0x47   :  { %800 = vmatprep.subr.bf16.mxu1 %v3141_v43 }
  0x49   :  { %711 = vmatpush2.bf16.msra.mxu0 %v3146_v44 }
  0x4a   :  { %801 = vmatpush1.bf16.msra.mxu1 %v3148_v45  ;;  %712 = vmatprep.subr.bf16.mxu0 %v3150_v46 }
  0x4b   :  { %802 = vmatprep.subr.bf16.mxu1 %v3154_v47 }
  0x4d   :  { %713 = vmatpush2.bf16.msra.mxu0 %v3156_v48  ;;  %v3277_v48 = vld [vmem:[#allocation2 + $0x288] ss:$16 sps:$4 sm:$0xff]  }
  0x4e   :  { %803 = vmatpush1.bf16.msra.mxu1 %v3158_v49  ;;  %714 = vmatprep.subr.bf16.mxu0 %v3162_v50  ;;  %v3273_v50 = vld [vmem:[#allocation2 + $0x28c] ss:$16 sps:$4 sm:$0xff]   ;;  %v3275_v49 = vld [vmem:[#allocation2 + $0x188] ss:$16 sps:$4 sm:$0xff]   ;;  %4157 = vst [vmem:[#allocation53_spill] sm:$0xff] %v3277_v48 }
  0x4f   :  { %804 = vmatprep.subr.bf16.mxu1 %v3166_v52  ;;  %v3253_v52 = vld [vmem:[#allocation2 + $0x2a8] ss:$16 sps:$4 sm:$0xff]   ;;  %4155 = vst [vmem:[#allocation51_spill] sm:$0xff] %v3273_v50  ;;  %4156 = vst [vmem:[#allocation52_spill] sm:$0xff] %v3275_v49 }
  0x50   :  { %4153 = vst [vmem:[#allocation49_spill] sm:$0xff] %v3253_v52 }
  0x51   :  { %715 = vmatpush2.bf16.msra.mxu0 %v3168_v53  ;;  %v3236_v53 = vld [vmem:[#allocation2 + $0x1c8] ss:$16 sps:$4 sm:$0xff]  }
  0x52   :  { %805 = vmatpush1.bf16.msra.mxu1 %v3172_v54  ;;  %716 = vmatprep.subr.bf16.mxu0 %v3176_v55  ;;  %v3204_v55 = vld [vmem:[#allocation2 + $0x100] ss:$16 sps:$4 sm:$0xff]   ;;  %v3208_v54 = vld [vmem:[#allocation2 + $0x1ec] ss:$16 sps:$4 sm:$0xff]   ;;  %4148 = vst [vmem:[#allocation44_spill] sm:$0xff] %v3236_v53 }
  0x53   :  { %806 = vmatprep.subr.bf16.mxu1 %v3178_v56  ;;  %4140 = vst [vmem:[#allocation36_spill] sm:$0xff] %v3204_v55  ;;  %v3206_v56 = vld [vmem:[#allocation2 + $0x8] ss:$16 sps:$4 sm:$0xff]   ;;  %4142 = vst [vmem:[#allocation38_spill] sm:$0xff] %v3208_v54 }
  0x54   :  { %4141 = vst [vmem:[#allocation37_spill] sm:$0xff] %v3206_v56 }
  0x55   :  { %717 = vmatpush2.bf16.msra.mxu0 %v3182_v57  ;;  %v3212_v57 = vld [vmem:[#allocation5 + $0x20] ss:$12 sps:$4 sm:$0xff]  }
  0x56   :  { %807 = vmatpush1.bf16.msra.mxu1 %v3184_v58  ;;  %718 = vmatprep.subr.bf16.mxu0 %v3186_v59  ;;  %v3216_v59 = vld [vmem:[#allocation2 + $0x2ec] ss:$16 sps:$4 sm:$0xff]   ;;  %v3221_v58 = vld [vmem:[#allocation2 + $0x1e8] ss:$16 sps:$4 sm:$0xff]  }
  0x57   :  { %808 = vmatprep.subr.bf16.mxu1 %v3190_v60  ;;  %4143 = vst [vmem:[#allocation39_spill] sm:$0xff] %v3216_v59  ;;  %v3218_v60 = vld [vmem:[#allocation5] ss:$12 sps:$4 sm:$0xff]   ;;  %786 = vmatmul.mubr.bf16.gmra.mxu1 %v3212_v57  ;;  %4144 = vst [vmem:[#allocation40_spill] sm:$0xff] %v3221_v58 }
  0x58   :  { %828 = vmatprep.mubr.bf16.mxu1 %v2476_v51  ;;  %v3240_v51 = vld [vmem:[#allocation2 + $0x2c8] ss:$16 sps:$4 sm:$0xff]  }
  0x59   :  { %719 = vmatpush2.bf16.msra.mxu0 %v3192_v61  ;;  %v3233_v61 = vld [vmem:[#allocation5 + $0x1c] ss:$12 sps:$4 sm:$0xff]   ;;  %4149 = vst [vmem:[#allocation45_spill] sm:$0xff] %v3240_v51 }
  0x5a   :  { %809 = vmatpush1.bf16.msra.mxu1 %v3194_v62  ;;  %720 = vmatprep.subr.bf16.mxu0 %v3198_v63  ;;  %v3225_v62 = vld [vmem:[#allocation2 + $0x2e8] ss:$16 sps:$4 sm:$0xff]   ;;  %v3231_v63 = vld [vmem:[#allocation2 + $0x2cc] ss:$16 sps:$4 sm:$0xff]  }
  0x5b   :  { %810 = vmatprep.subr.bf16.mxu1 %v3202_v0  ;;  %4145 = vst [vmem:[#allocation41_spill] sm:$0xff] %v3225_v62  ;;  %v3229_v0 = vld [vmem:[#allocation2 + $0x1cc] ss:$16 sps:$4 sm:$0xff]   ;;  %4147 = vst [vmem:[#allocation43_spill] sm:$0xff] %v3231_v63 }
  0x5c   :  { %4146 = vst [vmem:[#allocation42_spill] sm:$0xff] %v3229_v0 }
  0x5d   :  { %721 = vmatpush2.bf16.msra.mxu0 %v3204_v55  ;;  %v3251_v55 = vld [vmem:[#allocation2 + $0x1a8] ss:$16 sps:$4 sm:$0xff]  }
  0x5e   :  { %811 = vmatpush1.bf16.msra.mxu1 %v3206_v56  ;;  %849 = vmatprep.subr.bf16.mxu0 %v3216_v59  ;;  %v3242_v56 = vld [vmem:[#allocation2 + $0x1ac] ss:$16 sps:$4 sm:$0xff]   ;;  %4152 = vst [vmem:[#allocation48_spill] sm:$0xff] %v3251_v55 }
  0x5f   :  { %812 = vmatprep.subr.bf16.mxu1 %v3208_v54  ;;  %4150 = vst [vmem:[#allocation46_spill] sm:$0xff] %v3242_v56  ;;  %v3246_v59 = vld [vmem:[#allocation2 + $0x2ac] ss:$16 sps:$4 sm:$0xff]   ;;  %v154_v54 = vld [vmem:[%s4021_s2] sm:$0xff] }
  0x60   :  { %723 = vmatmul.mubr.bf16.vlgmr.msra.gmra.mxu0 %v3218_v60  ;;  %4151 = vst [vmem:[#allocation47_spill] sm:$0xff] %v3246_v59  ;;  %160 = vperm.xlu0 %2375, %v154_v54   ;;  %v3271_v54 = vld [vmem:[#allocation2 + $0x18c] ss:$16 sps:$4 sm:$0xff]  }
  0x61   :  { %850 = vmatpush1.bf16.msra.mxu0 %v3225_v62  ;;  %732 = vmatprep.mubr.bf16.mxu0 %v3233_v61  ;;  %v3256_v62 = vld [vmem:[#allocation5 + $0x18] ss:$12 sps:$4 sm:$0xff]   ;;  %4154 = vst [vmem:[#allocation50_spill] sm:$0xff] %v3271_v54 }
  0x62   :  { %813 = vmatpush2.bf16.msra.mxu1 %v3221_v58  ;;  %851 = vmatprep.subr.bf16.mxu0 %v3231_v63  ;;  %v155_v63 = vld [vmem:[%s4021_s2 + $0x8] sm:$0xff]  ;;  %v157_v58 = vld [vmem:[%s4021_s2 + $0x18] sm:$0xff] }
  0x63   :  { %814 = vmatprep.subr.bf16.mxu1 %v3229_v0  ;;  %v156_v0 = vld [vmem:[%s4021_s2 + $0x10] sm:$0xff] }
  0x64   :  { %170 = vperm.xlu1 %2376, %v156_v0   ;;  %165 = vperm.xlu0 %2375, %v155_v63   ;;  %v3279_v0 = vld [vmem:[#allocation2 + $0x16c] ss:$16 sps:$4 sm:$0xff]   ;;  %v3291_v63 = vld [vmem:[#allocation2 + $0x168] ss:$16 sps:$4 sm:$0xff]  }
  0x65   :  { %852 = vmatpush1.bf16.msra.mxu0 %v3240_v51  ;;  %4158 = vst [vmem:[#allocation54_spill] sm:$0xff] %v3279_v0  ;;  %v3281_v51 = vld [vmem:[#allocation2 + $0x26c] ss:$16 sps:$4 sm:$0xff]   ;;  %4161 = vst [vmem:[#allocation56_spill] sm:$0xff] %v3291_v63 }
  0x66   :  { %815 = vmatpush2.bf16.msra.mxu1 %v3236_v53  ;;  %853 = vmatprep.subr.bf16.mxu0 %v3246_v59  ;;  %4159 = vst [vmem:[#allocation55_spill] sm:$0xff] %v3281_v51  ;;  %v4160_v59 = vmov 0  }
  0x67   :  { %816 = vmatprep.subr.bf16.mxu1 %v3242_v56  ;;  %v3293_v56 = vld [vmem:[#allocation2 + $0x268] ss:$16 sps:$4 sm:$0xff]  }
  0x68   :  { %733 = vmatmul.mubr.bf16.gmra.mxu0 %v3256_v62  ;;  %175 = vperm.xlu1 %2376, %v157_v58   ;;  %4162 = vst [vmem:[#allocation57_spill] sm:$0xff] %v3293_v56  ;;  %v3297_v58 = vld [vmem:[#allocation2 + $0x14c] ss:$16 sps:$4 sm:$0xff]  }
  0x69   :  { %854 = vmatpush1.bf16.msra.mxu0 %v3253_v52  ;;  %881 = vmatprep.mubr.bf16.mxu0 %v4160_v59  ;;  %4163 = vst [vmem:[#allocation58_spill] sm:$0xff] %v3297_v58  ;;  %v3299_v52 = vld [vmem:[#allocation2 + $0x24c] ss:$16 sps:$4 sm:$0xff]  }
  0x6a   :  { %817 = vmatpush2.bf16.msra.mxu1 %v3251_v55  ;;  %855 = vmatprep.subr.bf16.mxu0 %v3273_v50  ;;  %4164 = vst [vmem:[#allocation59_spill] sm:$0xff] %v3299_v52  ;;  %v3303_v50 = vld [vmem:[#allocation2 + $0x148] ss:$16 sps:$4 sm:$0xff]  }
  0x6b   :  { %818 = vmatprep.subr.bf16.mxu1 %v3271_v54  ;;  %4165 = vst [vmem:[#allocation60_spill] sm:$0xff] %v3303_v50 }
  0x6d   :  { %856 = vmatpush1.bf16.msra.mxu0 %v3277_v48  ;;  %v3309_v48 = vld [vmem:[#allocation2 + $0x12c] ss:$16 sps:$4 sm:$0xff]  }
  0x6e   :  { %819 = vmatpush2.bf16.msra.mxu1 %v3275_v49  ;;  %857 = vmatprep.subr.bf16.mxu0 %v3281_v51  ;;  %v3305_v49 = vld [vmem:[#allocation2 + $0x248] ss:$16 sps:$4 sm:$0xff]  }
  0x6f   :  { %820 = vmatprep.subr.bf16.mxu1 %v3279_v0  ;;  %v3311_v0 = vld [vmem:[#allocation2 + $0x22c] ss:$16 sps:$4 sm:$0xff]   ;;  %v3315_v51 = vld [vmem:[#allocation2 + $0x128] ss:$16 sps:$4 sm:$0xff]  }
  0x70   :  { %4166 = vst [vmem:[#allocation61_spill] sm:$0xff] %v3311_v0 }
  0x71   :  { %858 = vmatpush1.bf16.msra.mxu0 %v3293_v56  ;;  %v3321_v56 = vld [vmem:[#allocation2 + $0x10c] ss:$16 sps:$4 sm:$0xff]  }
  0x72   :  { %821 = vmatpush2.bf16.msra.mxu1 %v3291_v63  ;;  %859 = vmatprep.subr.bf16.mxu0 %v3299_v52  ;;  %v3317_v63 = vld [vmem:[#allocation2 + $0x228] ss:$16 sps:$4 sm:$0xff]  }
  0x73   :  { %822 = vmatprep.subr.bf16.mxu1 %v3297_v58  ;;  %v3323_v58 = vld [vmem:[#allocation2 + $0x20c] ss:$16 sps:$4 sm:$0xff]   ;;  %v3327_v52 = vld [vmem:[#allocation2 + $0x108] ss:$16 sps:$4 sm:$0xff]  }
  0x75   :  { %860 = vmatpush1.bf16.msra.mxu0 %v3305_v49 }
  0x76   :  { %823 = vmatpush2.bf16.msra.mxu1 %v3303_v50  ;;  %861 = vmatprep.subr.bf16.mxu0 %v3311_v0  ;;  %v3329_v50 = vld [vmem:[#allocation2 + $0x208] ss:$16 sps:$4 sm:$0xff]   ;;  %v1314_v0 = vld [vmem:[%s4021_s2 + $0x20] sm:$0xff] }
  0x77   :  { %824 = vmatprep.subr.bf16.mxu1 %v3309_v48  ;;  %4167 = vst [vmem:[#allocation62_spill] sm:$0xff] %v3329_v50  ;;  %1320 = vperm.xlu0 %2375, %v1314_v0   ;;  %v1315_v0 = vld [vmem:[%s4021_s2 + $0x28] sm:$0xff] }
  0x78   :  { %1325 = vperm.xlu1 %2376, %v1315_v0   ;;  %v3396_v0 = vld [vmem:[#allocation5 + $0x98] ss:$12 sps:$4 sm:$0xff]  }
  0x79   :  { %862 = vmatpush1.bf16.msra.mxu0 %v3317_v63 }
  0x7a   :  { %825 = vmatpush2.bf16.msra.mxu1 %v3315_v51  ;;  %863 = vmatprep.subr.bf16.mxu0 %v3323_v58 }
  0x7b   :  { %826 = vmatprep.subr.bf16.mxu1 %v3321_v56 }
  0x7d   :  { %864 = vmatpush1.bf16.msra.mxu0 %v3329_v50  ;;  %v1316_v50 = vld [vmem:[%s4021_s2 + $0x30] sm:$0xff] }
  0x7e   :  { %827 = vmatpush2.bf16.msra.mxu1 %v3327_v52  ;;  %1062 = vmatprep.subr.bf16.mxu0 %v3018_v1 }
  0x7f   :  { %1115 = vmatprep.subr.bf16.mxu1 %v3020_v2  ;;  %1330 = vperm.xlu0 %2375, %v1316_v50   ;;  %v1317_v50 = vld [vmem:[%s4021_s2 + $0x38] sm:$0xff] }
  0x80   :  { %882 = vmatmul.mubr.bf16.vlgmr.msra.gmra.mxu0 %v3116_v35  ;;  %v2532_v35 = vld [vmem:[#allocation5 + $0x94] ss:$12 sps:$4 sm:$0xff]   ;;  %1335 = vperm.xlu1 %2376, %v1317_v50   ;;  %v3408_v50 = vld [vmem:[#allocation5 + $0xb0] ss:$12 sps:$4 sm:$0xff]  }
  0x81   :  { %829 = vmatmul.mubr.bf16.vlgmr.msra.gmra.mxu1 %v3218_v60  ;;  %1063 = vmatpush1.bf16.msra.mxu0 %v3023_v3  ;;  %v1006_v60 = vld [vmem:[%s4021_s2 + $0x60] sm:$0xff] }
  0x82   :  { %1116 = vmatpush1.bf16.msra.mxu1 %v3025_v4  ;;  %1064 = vmatprep.subr.bf16.mxu0 %v3028_v5 }
  0x83   :  { %1117 = vmatprep.subr.bf16.mxu1 %v3032_v6  ;;  %838 = vmatprep.mubr.bf16.mxu1 %v3233_v61  ;;  %v1008_v61 = vld [vmem:[%s4021_s2 + $0x70] sm:$0xff] }
  0x84   :  { %891 = vmatprep.mubr.bf16.mxu0 %v4160_v59  ;;  %1012 = vperm.xlu0 %2375, %v1006_v60   ;;  %v4168_v60 = vld [vmem:[#allocation20_spill] sm:$0xff] }
  0x85   :  { %1065 = vmatpush1.bf16.msra.mxu0 %v3034_v7 }
  0x86   :  { %1118 = vmatpush1.bf16.msra.mxu1 %v3037_v8  ;;  %1066 = vmatprep.subr.bf16.mxu0 %v3040_v9 }
  0x87   :  { %1119 = vmatprep.subr.bf16.mxu1 %v3042_v10 }
  0x88   :  { %892 = vmatmul.mubr.bf16.gmra.mxu0 %v3212_v57  ;;  %v1007_v57 = vld [vmem:[%s4021_s2 + $0x68] sm:$0xff]  ;;  %1022 = vperm.xlu0 %2375, %v1008_v61   ;;  %v4170_v61 = vld [vmem:[#allocation22_spill] sm:$0xff] }
  0x89   :  { %839 = vmatmul.mubr.bf16.gmra.mxu1 %v3256_v62  ;;  %1067 = vmatpush1.bf16.msra.mxu0 %v3044_v11  ;;  %v1009_v62 = vld [vmem:[%s4021_s2 + $0x78] sm:$0xff] }
  0x8a   :  { %1120 = vmatpush1.bf16.msra.mxu1 %v3046_v12  ;;  %1068 = vmatprep.subr.bf16.mxu0 %v3050_v13 }
  0x8b   :  { %1121 = vmatprep.subr.bf16.mxu1 %v3054_v14  ;;  %1147 = vmatprep.mubr.bf16.mxu1 %v4160_v59 }
  0x8c   :  { %1094 = vmatprep.mubr.bf16.mxu0 %v2532_v35  ;;  %1017 = vperm.xlu1 %2376, %v1007_v57   ;;  %v4169_v57 = vld [vmem:[#allocation21_spill] sm:$0xff] }
  0x8d   :  { %1069 = vmatpush1.bf16.msra.mxu0 %v3056_v15 }
  0x8e   :  { %1122 = vmatpush1.bf16.msra.mxu1 %v3060_v16  ;;  %1070 = vmatprep.subr.bf16.mxu0 %v3062_v17 }
  0x8f   :  { %1123 = vmatprep.subr.bf16.mxu1 %v3066_v18 }
  0x90   :  { %1027 = vperm.xlu1 %2376, %v1009_v62   ;;  %v4171_v62 = vld [vmem:[#allocation23_spill] sm:$0xff] }
  0x91   :  { %1071 = vmatpush1.bf16.msra.mxu0 %v3068_v19 }
  0x92   :  { %1124 = vmatpush1.bf16.msra.mxu1 %v3070_v20  ;;  %1072 = vmatprep.subr.bf16.mxu0 %v3074_v21 }
  0x93   :  { %1125 = vmatprep.subr.bf16.mxu1 %v3078_v22 }
  0x95   :  { %1073 = vmatpush1.bf16.msra.mxu0 %v3080_v23 }
  0x96   :  { %1126 = vmatpush1.bf16.msra.mxu1 %v3084_v24  ;;  %1074 = vmatprep.subr.bf16.mxu0 %v3086_v25 }
  0x97   :  { %1127 = vmatprep.subr.bf16.mxu1 %v3090_v26 }
  0x99   :  { %1075 = vmatpush1.bf16.msra.mxu0 %v3094_v27 }
  0x9a   :  { %1128 = vmatpush1.bf16.msra.mxu1 %v3096_v28  ;;  %1076 = vmatprep.subr.bf16.mxu0 %v3098_v29 }
  0x9b   :  { %1129 = vmatprep.subr.bf16.mxu1 %v3102_v30 }
  0x9d   :  { %1077 = vmatpush1.bf16.msra.mxu0 %v3104_v31 }
  0x9e   :  { %1130 = vmatpush1.bf16.msra.mxu1 %v3108_v32  ;;  %1078 = vmatprep.subr.bf16.mxu0 %v3112_v33 }
  0x9f   :  { %1168 = vmatprep.subr.bf16.mxu1 %v3114_v34 }
  0xa1   :  { %1148 = vmatmul.mubr.bf16.vlgmr.msra.gmra.mxu1 %v3396_v0  ;;  %1079 = vmatpush2.bf16.msra.mxu0 %v3120_v36 }
  0xa2   :  { %1169 = vmatpush1.bf16.msra.mxu1 %v3122_v37  ;;  %1080 = vmatprep.subr.bf16.mxu0 %v3124_v38 }
  0xa3   :  { %1170 = vmatprep.subr.bf16.mxu1 %v3128_v39  ;;  %1157 = vmatprep.mubr.bf16.mxu1 %v4160_v59 }
  0xa5   :  { %1081 = vmatpush2.bf16.msra.mxu0 %v3131_v40 }
  0xa6   :  { %1171 = vmatpush1.bf16.msra.mxu1 %v3135_v41  ;;  %1082 = vmatprep.subr.bf16.mxu0 %v3139_v42  ;;  %v4173_v42 = vld [vmem:[#allocation25_spill] sm:$0xff] }
  0xa7   :  { %1172 = vmatprep.subr.bf16.mxu1 %v3141_v43  ;;  %v4172_v43 = vld [vmem:[#allocation24_spill] sm:$0xff] }
  0xa9   :  { %1158 = vmatmul.mubr.bf16.gmra.mxu1 %v3408_v50  ;;  %1083 = vmatpush2.bf16.msra.mxu0 %v3146_v44  ;;  %v4174_v44 = vld [vmem:[#allocation26_spill] sm:$0xff] }
  0xaa   :  { %1173 = vmatpush1.bf16.msra.mxu1 %v3148_v45  ;;  %1084 = vmatprep.subr.bf16.mxu0 %v3150_v46  ;;  %v4175_v45 = vld [vmem:[#allocation27_spill] sm:$0xff]  ;;  %v4176_v46 = vld [vmem:[#allocation28_spill] sm:$0xff] }
  0xab   :  { %1174 = vmatprep.subr.bf16.mxu1 %v3154_v47  ;;  %1200 = vmatprep.mubr.bf16.mxu1 %v2532_v35  ;;  %v4177_v47 = vld [vmem:[#allocation29_spill] sm:$0xff]  ;;  %v4178_v35 = vld [vmem:[#allocation30_spill] sm:$0xff] }
  0xad   :  { %1085 = vmatpush2.bf16.msra.mxu0 %v4168_v60  ;;  %v4179_v60 = vld [vmem:[#allocation31_spill] sm:$0xff] }
  0xae   :  { %1175 = vmatpush1.bf16.msra.mxu1 %v4169_v57  ;;  %1086 = vmatprep.subr.bf16.mxu0 %v4170_v61  ;;  %v4180_v57 = vld [vmem:[#allocation32_spill] sm:$0xff]  ;;  %v4181_v61 = vld [vmem:[#allocation33_spill] sm:$0xff] }
  0xaf   :  { %1176 = vmatprep.subr.bf16.mxu1 %v4171_v62  ;;  %v4182_v62 = vld [vmem:[#allocation34_spill] sm:$0xff] }
  0xb1   :  { %1087 = vmatpush2.bf16.msra.mxu0 %v4172_v43  ;;  %v4183_v43 = vld [vmem:[#allocation35_spill] sm:$0xff] }
  0xb2   :  { %1177 = vmatpush1.bf16.msra.mxu1 %v4173_v42  ;;  %1088 = vmatprep.subr.bf16.mxu0 %v4174_v44  ;;  %v2530_v42 = vld [vmem:[#allocation5 + $0x90] ss:$12 sps:$4 sm:$0xff]  }
  0xb3   :  { %1178 = vmatprep.subr.bf16.mxu1 %v4175_v45  ;;  %v4184_v44 = vld [vmem:[#allocation36_spill] sm:$0xff]  ;;  %v4185_v45 = vld [vmem:[#allocation37_spill] sm:$0xff] }
  0xb5   :  { %1089 = vmatpush2.bf16.msra.mxu0 %v4176_v46  ;;  %v4186_v46 = vld [vmem:[#allocation38_spill] sm:$0xff] }
  0xb6   :  { %1179 = vmatpush1.bf16.msra.mxu1 %v4177_v47  ;;  %1090 = vmatprep.subr.bf16.mxu0 %v4178_v35  ;;  %v4187_v47 = vld [vmem:[#allocation39_spill] sm:$0xff] }
  0xb7   :  { %1180 = vmatprep.subr.bf16.mxu1 %v4179_v60  ;;  %v2533_v35 = vld [vmem:[#allocation5 + $0xac] ss:$12 sps:$4 sm:$0xff]   ;;  %v4188_v60 = vld [vmem:[#allocation40_spill] sm:$0xff] }
  0xb9   :  { %1091 = vmatpush2.bf16.msra.mxu0 %v4180_v57  ;;  %v4189_v57 = vld [vmem:[#allocation41_spill] sm:$0xff] }
  0xba   :  { %1181 = vmatpush1.bf16.msra.mxu1 %v4181_v61  ;;  %1092 = vmatprep.subr.bf16.mxu0 %v4182_v62  ;;  %v4190_v61 = vld [vmem:[#allocation42_spill] sm:$0xff]  ;;  %v4191_v62 = vld [vmem:[#allocation43_spill] sm:$0xff] }
  0xbb   :  { %1182 = vmatprep.subr.bf16.mxu1 %v4183_v43  ;;  %v2535_v43 = vld [vmem:[#allocation5 + $0xa8] ss:$12 sps:$4 sm:$0xff]  }
  0xbd   :  { %1093 = vmatpush2.bf16.msra.mxu0 %v4184_v44  ;;  %v4192_v44 = vld [vmem:[#allocation45_spill] sm:$0xff] }
  0xbe   :  { %1183 = vmatpush1.bf16.msra.mxu1 %v4185_v45  ;;  %1221 = vmatprep.subr.bf16.mxu0 %v4187_v47  ;;  %v4193_v45 = vld [vmem:[#allocation46_spill] sm:$0xff] }
  0xbf   :  { %1184 = vmatprep.subr.bf16.mxu1 %v4186_v46  ;;  %v4194_v46 = vld [vmem:[#allocation47_spill] sm:$0xff] }
  0xc0   :  { %1095 = vmatmul.mubr.bf16.vlgmr.msra.gmra.mxu0 %v2530_v42 }
  0xc1   :  { %1222 = vmatpush1.bf16.msra.mxu0 %v4189_v57  ;;  %1104 = vmatprep.mubr.bf16.mxu0 %v2533_v35  ;;  %v4202_v57 = vld [vmem:[#allocation57_spill] sm:$0xff] }
  0xc2   :  { %1185 = vmatpush2.bf16.msra.mxu1 %v4188_v60  ;;  %1223 = vmatprep.subr.bf16.mxu0 %v4191_v62  ;;  %v4195_v60 = vld [vmem:[#allocation49_spill] sm:$0xff]  ;;  %v4197_v62 = vld [vmem:[#allocation52_spill] sm:$0xff] }
  0xc3   :  { %1186 = vmatprep.subr.bf16.mxu1 %v4190_v61  ;;  %v4196_v61 = vld [vmem:[#allocation51_spill] sm:$0xff] }
  0xc5   :  { %1224 = vmatpush1.bf16.msra.mxu0 %v4192_v44  ;;  %v4199_v44 = vld [vmem:[#allocation54_spill] sm:$0xff] }
  0xc6   :  { %1187 = vmatpush2.bf16.msra.mxu1 %v3236_v53  ;;  %1225 = vmatprep.subr.bf16.mxu0 %v4194_v46  ;;  %v4198_v53 = vld [vmem:[#allocation53_spill] sm:$0xff]  ;;  %v4201_v46 = vld [vmem:[#allocation56_spill] sm:$0xff] }
  0xc7   :  { %1188 = vmatprep.subr.bf16.mxu1 %v4193_v45  ;;  %v4200_v45 = vld [vmem:[#allocation55_spill] sm:$0xff] }
  0xc8   :  { %1105 = vmatmul.mubr.bf16.gmra.mxu0 %v2535_v43 }
  0xc9   :  { %1226 = vmatpush1.bf16.msra.mxu0 %v4195_v60  ;;  %1253 = vmatprep.mubr.bf16.mxu0 %v4160_v59  ;;  %v4204_v60 = vld [vmem:[#allocation59_spill] sm:$0xff] }
  0xca   :  { %1189 = vmatpush2.bf16.msra.mxu1 %v3251_v55  ;;  %1227 = vmatprep.subr.bf16.mxu0 %v4196_v61  ;;  %v4203_v55 = vld [vmem:[#allocation58_spill] sm:$0xff] }
  0xcb   :  { %1190 = vmatprep.subr.bf16.mxu1 %v3271_v54  ;;  %v4205_v54 = vld [vmem:[#allocation60_spill] sm:$0xff] }
  0xcd   :  { %1228 = vmatpush1.bf16.msra.mxu0 %v4198_v53 }
  0xce   :  { %1191 = vmatpush2.bf16.msra.mxu1 %v4197_v62  ;;  %1229 = vmatprep.subr.bf16.mxu0 %v4200_v45  ;;  %v4206_v62 = vld [vmem:[#allocation61_spill] sm:$0xff] }
  0xcf   :  { %1192 = vmatprep.subr.bf16.mxu1 %v4199_v44 }
  0xd1   :  { %1230 = vmatpush1.bf16.msra.mxu0 %v4202_v57 }
  0xd2   :  { %1193 = vmatpush2.bf16.msra.mxu1 %v4201_v46  ;;  %1231 = vmatprep.subr.bf16.mxu0 %v4204_v60 }
  0xd3   :  { %1194 = vmatprep.subr.bf16.mxu1 %v4203_v55  ;;  %v4207_v55 = vld [vmem:[#allocation62_spill] sm:$0xff] }
  0xd5   :  { %1232 = vmatpush1.bf16.msra.mxu0 %v3305_v49 }
  0xd6   :  { %1195 = vmatpush2.bf16.msra.mxu1 %v4205_v54  ;;  %1233 = vmatprep.subr.bf16.mxu0 %v4206_v62 }
  0xd7   :  { %1196 = vmatprep.subr.bf16.mxu1 %v3309_v48 }
  0xd9   :  { %1234 = vmatpush1.bf16.msra.mxu0 %v3317_v63 }
  0xda   :  { %1197 = vmatpush2.bf16.msra.mxu1 %v3315_v51  ;;  %1235 = vmatprep.subr.bf16.mxu0 %v3323_v58 }
  0xdb   :  { %1198 = vmatprep.subr.bf16.mxu1 %v3321_v56 }
  0xdd   :  { %1236 = vmatpush1.bf16.msra.mxu0 %v4207_v55 }
  0xde   :  { %1199 = vmatpush2.bf16.msra.mxu1 %v3327_v52  ;;  %1370 = vmatprep.subr.bf16.mxu0 %v3018_v1  ;;  %v2540_v1 = vld [vmem:[#allocation5 + $0x34] ss:$12 sps:$4 sm:$0xff]  }
  0xdf   :  { %1423 = vmatprep.subr.bf16.mxu1 %v3020_v2  ;;  %v3504_v2 = vld [vmem:[#allocation5 + $0x38] ss:$12 sps:$4 sm:$0xff]  }
  0xe0   :  { %1254 = vmatmul.mubr.bf16.vlgmr.msra.gmra.mxu0 %v3396_v0  ;;  %v4236_v0 = vld [vmem:[#allocation43_spill] sm:$0xff] }
  0xe1   :  { %1201 = vmatmul.mubr.bf16.vlgmr.msra.gmra.mxu1 %v2530_v42  ;;  %1371 = vmatpush1.bf16.msra.mxu0 %v3023_v3  ;;  %v3516_v3 = vld [vmem:[#allocation5 + $0x50] ss:$12 sps:$4 sm:$0xff]  }
  0xe2   :  { %1424 = vmatpush1.bf16.msra.mxu1 %v3025_v4  ;;  %1372 = vmatprep.subr.bf16.mxu0 %v3028_v5  ;;  %v4208_v4 = vld [vmem:[#allocation14_spill] sm:$0xff]  ;;  %v4209_v5 = vld [vmem:[#allocation15_spill] sm:$0xff] }
  0xe3   :  { %1425 = vmatprep.subr.bf16.mxu1 %v3032_v6  ;;  %1210 = vmatprep.mubr.bf16.mxu1 %v2533_v35  ;;  %v4210_v6 = vld [vmem:[#allocation16_spill] sm:$0xff] }
  0xe4   :  { %1263 = vmatprep.mubr.bf16.mxu0 %v4160_v59 }
  0xe5   :  { %1373 = vmatpush1.bf16.msra.mxu0 %v3034_v7  ;;  %v4211_v7 = vld [vmem:[#allocation17_spill] sm:$0xff] }
  0xe6   :  { %1426 = vmatpush1.bf16.msra.mxu1 %v3037_v8  ;;  %1374 = vmatprep.subr.bf16.mxu0 %v3040_v9  ;;  %v4212_v8 = vld [vmem:[#allocation18_spill] sm:$0xff]  ;;  %v4213_v9 = vld [vmem:[#allocation19_spill] sm:$0xff] }
  0xe7   :  { %1427 = vmatprep.subr.bf16.mxu1 %v3042_v10  ;;  %v4214_v10 = vld [vmem:[#allocation20_spill] sm:$0xff] }
  0xe8   :  { %1264 = vmatmul.mubr.bf16.gmra.mxu0 %v3408_v50 }
  0xe9   :  { %1211 = vmatmul.mubr.bf16.gmra.mxu1 %v2535_v43  ;;  %1375 = vmatpush1.bf16.msra.mxu0 %v3044_v11  ;;  %v4215_v11 = vld [vmem:[#allocation21_spill] sm:$0xff]  ;;  %v4235_v43 = vld [vmem:[#allocation42_spill] sm:$0xff] }
  0xea   :  { %1428 = vmatpush1.bf16.msra.mxu1 %v3046_v12  ;;  %1376 = vmatprep.subr.bf16.mxu0 %v3050_v13  ;;  %v4216_v12 = vld [vmem:[#allocation22_spill] sm:$0xff]  ;;  %v4217_v13 = vld [vmem:[#allocation23_spill] sm:$0xff] }
  0xeb   :  { %1429 = vmatprep.subr.bf16.mxu1 %v3054_v14  ;;  %1455 = vmatprep.mubr.bf16.mxu1 %v4160_v59  ;;  %v4218_v14 = vld [vmem:[#allocation24_spill] sm:$0xff] }
  0xec   :  { %1402 = vmatprep.mubr.bf16.mxu0 %v2540_v1 }
  0xed   :  { %1377 = vmatpush1.bf16.msra.mxu0 %v3056_v15  ;;  %v4219_v15 = vld [vmem:[#allocation25_spill] sm:$0xff] }
  0xee   :  { %1430 = vmatpush1.bf16.msra.mxu1 %v3060_v16  ;;  %1378 = vmatprep.subr.bf16.mxu0 %v3062_v17  ;;  %v4220_v16 = vld [vmem:[#allocation26_spill] sm:$0xff]  ;;  %v4221_v17 = vld [vmem:[#allocation27_spill] sm:$0xff] }
  0xef   :  { %1431 = vmatprep.subr.bf16.mxu1 %v3066_v18 }
  0xf1   :  { %1379 = vmatpush1.bf16.msra.mxu0 %v3068_v19  ;;  %v4222_v19 = vld [vmem:[#allocation28_spill] sm:$0xff] }
  0xf2   :  { %1432 = vmatpush1.bf16.msra.mxu1 %v3070_v20  ;;  %1380 = vmatprep.subr.bf16.mxu0 %v3074_v21  ;;  %v4223_v20 = vld [vmem:[#allocation29_spill] sm:$0xff]  ;;  %v4224_v21 = vld [vmem:[#allocation30_spill] sm:$0xff] }
  0xf3   :  { %1433 = vmatprep.subr.bf16.mxu1 %v3078_v22  ;;  %v4225_v22 = vld [vmem:[#allocation31_spill] sm:$0xff] }
  0xf5   :  { %1381 = vmatpush1.bf16.msra.mxu0 %v3080_v23 }
  0xf6   :  { %1434 = vmatpush1.bf16.msra.mxu1 %v3084_v24  ;;  %1382 = vmatprep.subr.bf16.mxu0 %v3086_v25  ;;  %v4226_v24 = vld [vmem:[#allocation32_spill] sm:$0xff]  ;;  %v4227_v25 = vld [vmem:[#allocation33_spill] sm:$0xff] }
  0xf7   :  { %1435 = vmatprep.subr.bf16.mxu1 %v3090_v26  ;;  %v4228_v26 = vld [vmem:[#allocation34_spill] sm:$0xff] }
  0xf9   :  { %1383 = vmatpush1.bf16.msra.mxu0 %v3094_v27  ;;  %v4229_v27 = vld [vmem:[#allocation35_spill] sm:$0xff] }
  0xfa   :  { %1436 = vmatpush1.bf16.msra.mxu1 %v3096_v28  ;;  %1384 = vmatprep.subr.bf16.mxu0 %v3098_v29  ;;  %v3543_v28 = vpop.permute.xlu0 %160 }
  0xfb   :  { %1437 = vmatprep.subr.bf16.mxu1 %v3102_v30  ;;  %v3545_v30 = vld [vmem:[#allocation5 + $0x30] ss:$12 sps:$4 sm:$0xff]  }
  0xfd   :  { %1385 = vmatpush1.bf16.msra.mxu0 %v3104_v31  ;;  %v4230_v31 = vld [vmem:[#allocation36_spill] sm:$0xff] }
  0xfe   :  { %1438 = vmatpush1.bf16.msra.mxu1 %v3108_v32  ;;  %1386 = vmatprep.subr.bf16.mxu0 %v3112_v33  ;;  %v4231_v32 = vld [vmem:[#allocation37_spill] sm:$0xff]  ;;  %v4232_v33 = vld [vmem:[#allocation38_spill] sm:$0xff] }
  0xff   :  { %1476 = vmatprep.subr.bf16.mxu1 %v3114_v34  ;;  %v3551_v34 = vld [vmem:[#allocation5 + $0x4c] ss:$12 sps:$4 sm:$0xff]  }
 0x101   :  { %1456 = vmatmul.mubr.bf16.vlgmr.msra.gmra.mxu1 %v3504_v2  ;;  %1387 = vmatpush2.bf16.msra.mxu0 %v3120_v36  ;;  %v777_v18 = vpop.f32.mrf.mxu1 }
 0x102   :  { %1477 = vmatpush1.bf16.msra.mxu1 %v3122_v37  ;;  %1388 = vmatprep.subr.bf16.mxu0 %v3124_v38 }
 0x103   :  { %1478 = vmatprep.subr.bf16.mxu1 %v3128_v39  ;;  %1465 = vmatprep.mubr.bf16.mxu1 %v4160_v59  ;;  %v779_v23 = vpop.f32.mrf.mxu1  ;;  %v4233_v39 = vld [vmem:[#allocation40_spill] sm:$0xff] }
 0x105   :  { %1389 = vmatpush2.bf16.msra.mxu0 %v3131_v40  ;;  %v781_v29 = vpop.f32.mrf.mxu1  ;;  %v4234_v40 = vld [vmem:[#allocation41_spill] sm:$0xff] }
 0x106   :  { %1479 = vmatpush1.bf16.msra.mxu1 %v3135_v41  ;;  %1390 = vmatprep.subr.bf16.mxu0 %v4208_v4  ;;  %v3557_v41 = vpop.permute.xlu0 %165 }
 0x107   :  { %1480 = vmatprep.subr.bf16.mxu1 %v4209_v5  ;;  %v783_v36 = vpop.f32.mrf.mxu1  ;;  %v3567_v5 = vld [vmem:[#allocation5 + $0x48] ss:$12 sps:$4 sm:$0xff]  }
 0x109   :  { %1466 = vmatmul.mubr.bf16.gmra.mxu1 %v3516_v3  ;;  %1391 = vmatpush2.bf16.msra.mxu0 %v4210_v6 }
 0x10a   :  { %1481 = vmatpush1.bf16.msra.mxu1 %v4211_v7  ;;  %1392 = vmatprep.subr.bf16.mxu0 %v4212_v8  ;;  %v4237_v8 = vld [vmem:[#allocation44_spill] sm:$0xff] }
 0x10b   :  { %1482 = vmatprep.subr.bf16.mxu1 %v4213_v9  ;;  %1508 = vmatprep.mubr.bf16.mxu1 %v2540_v1  ;;  %v3565_v1 = vpop.permute.xlu1 %170  ;;  %v4238_v9 = vld [vmem:[#allocation45_spill] sm:$0xff] }
 0x10d   :  { %1393 = vmatpush2.bf16.msra.mxu0 %v4214_v10 }
 0x10e   :  { %1483 = vmatpush1.bf16.msra.mxu1 %v4215_v11  ;;  %1394 = vmatprep.subr.bf16.mxu0 %v4216_v12  ;;  %v4239_v11 = vld [vmem:[#allocation46_spill] sm:$0xff]  ;;  %v4240_v12 = vld [vmem:[#allocation47_spill] sm:$0xff] }
 0x10f   :  { %1484 = vmatprep.subr.bf16.mxu1 %v4217_v13 }
 0x111   :  { %1395 = vmatpush2.bf16.msra.mxu0 %v4218_v14 }
 0x112   :  { %1485 = vmatpush1.bf16.msra.mxu1 %v4219_v15  ;;  %1396 = vmatprep.subr.bf16.mxu0 %v4220_v16 }
 0x113   :  { %1486 = vmatprep.subr.bf16.mxu1 %v4221_v17 }
 0x115   :  { %1397 = vmatpush2.bf16.msra.mxu0 %v4222_v19  ;;  %v4242_v19 = vld [vmem:[#allocation49_spill] sm:$0xff] }
 0x116   :  { %1487 = vmatpush1.bf16.msra.mxu1 %v4223_v20  ;;  %1398 = vmatprep.subr.bf16.mxu0 %v4224_v21  ;;  %v3585_v21 = vpop.permute.xlu1 %175 }
 0x117   :  { %1488 = vmatprep.subr.bf16.mxu1 %v4225_v22  ;;  %v4243_v22 = vld [vmem:[#allocation50_spill] sm:$0xff] }
 0x119   :  { %1399 = vmatpush2.bf16.msra.mxu0 %v4226_v24 }
 0x11a   :  { %1489 = vmatpush1.bf16.msra.mxu1 %v4227_v25  ;;  %1400 = vmatprep.subr.bf16.mxu0 %v4228_v26 }
 0x11b   :  { %1490 = vmatprep.subr.bf16.mxu1 %v4229_v27 }
 0x11d   :  { %1401 = vmatpush2.bf16.msra.mxu0 %v4230_v31 }
 0x11e   :  { %1491 = vmatpush1.bf16.msra.mxu1 %v4231_v32  ;;  %1529 = vmatprep.subr.bf16.mxu0 %v4187_v47  ;;  %v787_v47 = vpop.f32.mrf.mxu1 }
 0x11f   :  { %1492 = vmatprep.subr.bf16.mxu1 %v4232_v33 }
 0x120   :  { %v724_v37 = vpop.f32.mrf.mxu0  ;;  %1403 = vmatmul.mubr.bf16.vlgmr.msra.gmra.mxu0 %v3545_v30  ;;  %v789_v13 = vpop.f32.mrf.mxu1 }
 0x121   :  { %v725_v38 = vadd.f32 %v724_v37, %v3543_v28  ;;  %1530 = vmatpush1.bf16.msra.mxu0 %v4234_v40  ;;  %1412 = vmatprep.mubr.bf16.mxu0 %v3551_v34  ;;  %v4245_v40 = vld [vmem:[#allocation58_spill] sm:$0xff] }
 0x122   :  { %1493 = vmatpush2.bf16.msra.mxu1 %v4233_v39  ;;  %v726_v42 = vpop.f32.mrf.mxu0  ;;  %1531 = vmatprep.subr.bf16.mxu0 %v4236_v0  ;;  %v791_v24 = vpop.f32.mrf.mxu1 }
 0x123   :  { %1494 = vmatprep.subr.bf16.mxu1 %v4235_v43  ;;  %v3561_v50 = vadd.f32 %v777_v18, %v725_v38  ;;  %v727_v35 = vadd.f32 %v726_v42, %v3543_v28  ;;  %v4241_v18 = vld [vmem:[#allocation48_spill] sm:$0xff] }
 0x124   :  { %v728_v4 = vpop.f32.mrf.mxu0  ;;  %v2809_v42 = vld [vmem:[#allocation2 + $0xe4] ss:$16 sps:$4 sm:$0xff]  }
 0x125   :  { %v3569_v6 = vadd.f32 %v779_v23, %v727_v35  ;;  %v729_v7 = vadd.f32 %v728_v4, %v3557_v41  ;;  %1532 = vmatpush1.bf16.msra.mxu0 %v4238_v9  ;;  %v2810_v43 = vld [vmem:[#allocation2 + $0x2e4] ss:$16 sps:$4 sm:$0xff]   ;;  %v2811_v4 = vld [vmem:[#allocation2 + $0xe0] ss:$16 sps:$4 sm:$0xff]  }
 0x126   :  { %1495 = vmatpush2.bf16.msra.mxu1 %v4237_v8  ;;  %v730_v10 = vpop.f32.mrf.mxu0  ;;  %1533 = vmatprep.subr.bf16.mxu0 %v4240_v12 }
 0x127   :  { %1496 = vmatprep.subr.bf16.mxu1 %v4239_v11  ;;  %v3576_v14 = vadd.f32 %v781_v29, %v729_v7  ;;  %v731_v15 = vadd.f32 %v730_v10, %v3557_v41  ;;  %v4244_v29 = vld [vmem:[#allocation52_spill] sm:$0xff] }
 0x128   :  { %1413 = vmatmul.mubr.bf16.gmra.mxu0 %v3567_v5  ;;  %v734_v16 = vpop.f32.mrf.mxu0  ;;  %v2812_v7 = vld [vmem:[#allocation2 + $0x2e0] ss:$16 sps:$4 sm:$0xff]  }
 0x129   :  { %v3580_v17 = vadd.f32 %v783_v36, %v731_v15  ;;  %1534 = vmatpush1.bf16.msra.mxu0 %v4242_v19  ;;  %v735_v20 = vadd.f32 %v734_v16, %v3565_v1  ;;  %1561 = vmatprep.mubr.bf16.mxu0 %v4160_v59  ;;  %v793_v36 = vpop.f32.mrf.mxu1  ;;  %v2814_v15 = vld [vmem:[#allocation2 + $0x2c4] ss:$16 sps:$4 sm:$0xff]  }
 0x12a   :  { %1497 = vmatpush2.bf16.msra.mxu1 %v4241_v18  ;;  %1535 = vmatprep.subr.bf16.mxu0 %v4196_v61  ;;  %v736_v23 = vpop.f32.mrf.mxu0 }
 0x12b   :  { %1498 = vmatprep.subr.bf16.mxu1 %v4243_v22  ;;  %v737_v25 = vadd.f32 %v736_v23, %v3565_v1  ;;  %v3590_v26 = vadd.f32 %v787_v47, %v735_v20  ;;  %v1734_v23 = vld [vmem:[%s4021_s2 + $0x40] sm:$0xff] }
 0x12c   :  { %v738_v27 = vpop.f32.mrf.mxu0  ;;  %1740 = vperm.xlu0 %2375, %v1734_v23  }
 0x12d   :  { %1536 = vmatpush1.bf16.msra.mxu0 %v4198_v53  ;;  %v3595_v31 = vadd.f32 %v789_v13, %v737_v25  ;;  %v739_v32 = vadd.f32 %v738_v27, %v3585_v21  ;;  %v2813_v13 = vld [vmem:[#allocation2 + $0xc4] ss:$16 sps:$4 sm:$0xff]   ;;  %v2815_v27 = vld [vmem:[#allocation2 + $0xc0] ss:$16 sps:$4 sm:$0xff]  }
 0x12e   :  { %1499 = vmatpush2.bf16.msra.mxu1 %v4244_v29  ;;  %1537 = vmatprep.subr.bf16.mxu0 %v4200_v45  ;;  %v740_v33 = vpop.f32.mrf.mxu0 }
 0x12f   :  { %1500 = vmatprep.subr.bf16.mxu1 %v4199_v44  ;;  %v741_v37 = vadd.f32 %v740_v33, %v3585_v21  ;;  %v3601_v38 = vadd.f32 %v791_v24, %v739_v32  ;;  %v2816_v32 = vld [vmem:[#allocation2 + $0x2c0] ss:$16 sps:$4 sm:$0xff]  }
 0x131   :  { %1538 = vmatpush1.bf16.msra.mxu0 %v4202_v57  ;;  %v3605_v39 = vadd.f32 %v793_v36, %v741_v37  ;;  %v2817_v36 = vld [vmem:[#allocation2 + $0xa4] ss:$16 sps:$4 sm:$0xff]   ;;  %v1735_v37 = vld [vmem:[%s4021_s2 + $0x48] sm:$0xff] }
 0x132   :  { %1501 = vmatpush2.bf16.msra.mxu1 %v4201_v46  ;;  %1539 = vmatprep.subr.bf16.mxu0 %v4204_v60 }
 0x133   :  { %1502 = vmatprep.subr.bf16.mxu1 %v4245_v40  ;;  %1745 = vperm.xlu1 %2376, %v1735_v37  }
 0x135   :  { %1540 = vmatpush1.bf16.msra.mxu0 %v3305_v49 }
 0x136   :  { %1503 = vmatpush2.bf16.msra.mxu1 %v4205_v54  ;;  %1541 = vmatprep.subr.bf16.mxu0 %v4206_v62 }
 0x137   :  { %1504 = vmatprep.subr.bf16.mxu1 %v3309_v48 }
 0x139   :  { %1542 = vmatpush1.bf16.msra.mxu0 %v3317_v63 }
 0x13a   :  { %1505 = vmatpush2.bf16.msra.mxu1 %v3315_v51  ;;  %1543 = vmatprep.subr.bf16.mxu0 %v3323_v58 }
 0x13b   :  { %1506 = vmatprep.subr.bf16.mxu1 %v3321_v56 }
 0x13d   :  { %1544 = vmatpush1.bf16.msra.mxu0 %v4207_v55 }
 0x13e   :  { %1507 = vmatpush2.bf16.msra.mxu1 %v3327_v52  ;;  %1790 = vmatprep.subr.bf16.mxu0 %v2809_v42 }
 0x13f   :  { %1843 = vmatprep.subr.bf16.mxu1 %v2810_v43 }
 0x140   :  { %v883_v47 = vpop.f32.mrf.mxu0  ;;  %1562 = vmatmul.mubr.bf16.vlgmr.msra.gmra.mxu0 %v3504_v2 }
 0x141   :  { %v830_v0 = vpop.f32.mrf.mxu1  ;;  %1509 = vmatmul.mubr.bf16.vlgmr.msra.gmra.mxu1 %v3545_v30  ;;  %1791 = vmatpush1.bf16.msra.mxu0 %v2811_v4 }
 0x142   :  { %v831_v35 = vadd.f32 %v830_v0, %v3543_v28  ;;  %1844 = vmatpush1.bf16.msra.mxu1 %v2812_v7  ;;  %v885_v10 = vpop.f32.mrf.mxu0  ;;  %1792 = vmatprep.subr.bf16.mxu0 %v2813_v13  ;;  %v3639_v0 = vld [vmem:[#allocation5 + $0x64] ss:$12 sps:$4 sm:$0xff]  }
 0x143   :  { %v832_v8 = vpop.f32.mrf.mxu1  ;;  %1845 = vmatprep.subr.bf16.mxu1 %v2814_v15  ;;  %1518 = vmatprep.mubr.bf16.mxu1 %v3551_v34  ;;  %v2818_v34 = vld [vmem:[#allocation2 + $0x2a4] ss:$16 sps:$4 sm:$0xff]   ;;  %v2819_v7 = vld [vmem:[#allocation2 + $0xa0] ss:$16 sps:$4 sm:$0xff]  }
 0x144   :  { %v3622_v16 = vadd.f32 %v883_v47, %v831_v35  ;;  %v833_v20 = vadd.f32 %v832_v8, %v3543_v28  ;;  %1571 = vmatprep.mubr.bf16.mxu0 %v4160_v59  ;;  %v887_v30 = vpop.f32.mrf.mxu0  ;;  %v2820_v8 = vld [vmem:[#allocation2 + $0x2a0] ss:$16 sps:$4 sm:$0xff]   ;;  %v2821_v13 = vld [vmem:[#allocation2 + $0x84] ss:$16 sps:$4 sm:$0xff]  }
 0x145   :  { %v834_v2 = vpop.f32.mrf.mxu1  ;;  %1793 = vmatpush1.bf16.msra.mxu0 %v2815_v27  ;;  %v2823_v27 = vld [vmem:[#allocation2 + $0x80] ss:$16 sps:$4 sm:$0xff]  }
 0x146   :  { %v3630_v24 = vadd.f32 %v885_v10, %v833_v20  ;;  %v835_v25 = vadd.f32 %v834_v2, %v3557_v41  ;;  %1846 = vmatpush1.bf16.msra.mxu1 %v2816_v32  ;;  %v889_v28 = vpop.f32.mrf.mxu0  ;;  %1794 = vmatprep.subr.bf16.mxu0 %v2817_v36  ;;  %v2824_v32 = vld [vmem:[#allocation2 + $0x280] ss:$16 sps:$4 sm:$0xff]   ;;  %v2825_v36 = vld [vmem:[#allocation2 + $0x64] ss:$16 sps:$4 sm:$0xff]  }
 0x147   :  { %v836_v33 = vpop.f32.mrf.mxu1  ;;  %1847 = vmatprep.subr.bf16.mxu1 %v2818_v34 }
 0x148   :  { %v3636_v42 = vadd.f32 %v887_v30, %v835_v25  ;;  %v837_v43 = vadd.f32 %v836_v33, %v3557_v41  ;;  %1572 = vmatmul.mubr.bf16.gmra.mxu0 %v3516_v3  ;;  %v893_v35 = vpop.f32.mrf.mxu0  ;;  %v1736_v41 = vld [vmem:[%s4021_s2 + $0x50] sm:$0xff] }
 0x149   :  { %1519 = vmatmul.mubr.bf16.gmra.mxu1 %v3567_v5  ;;  %v840_v47 = vpop.f32.mrf.mxu1  ;;  %1795 = vmatpush1.bf16.msra.mxu0 %v2819_v7  ;;  %v1737_v5 = vld [vmem:[%s4021_s2 + $0x58] sm:$0xff]  ;;  %v2822_v3 = vld [vmem:[#allocation2 + $0x284] ss:$16 sps:$4 sm:$0xff]   ;;  %v2828_v7 = vld [vmem:[#allocation2 + $0x260] ss:$16 sps:$4 sm:$0xff]  }
 0x14a   :  { %v3643_v4 = vadd.f32 %v889_v28, %v837_v43  ;;  %1848 = vmatpush1.bf16.msra.mxu1 %v2820_v8  ;;  %v841_v10 = vadd.f32 %v840_v47, %v3565_v1  ;;  %1796 = vmatprep.subr.bf16.mxu0 %v2821_v13  ;;  %v895_v20 = vpop.f32.mrf.mxu0  ;;  %v2832_v13 = vld [vmem:[#allocation2 + $0x240] ss:$16 sps:$4 sm:$0xff]  }
 0x14b   :  { %1849 = vmatprep.subr.bf16.mxu1 %v2822_v3  ;;  %v842_v15 = vpop.f32.mrf.mxu1  ;;  %1875 = vmatprep.mubr.bf16.mxu1 %v4160_v59  ;;  %v2833_v3 = vld [vmem:[#allocation2 + $0x24] ss:$16 sps:$4 sm:$0xff]  }
 0x14c   :  { %v843_v2 = vadd.f32 %v842_v15, %v3565_v1  ;;  %v3653_v30 = vadd.f32 %v893_v35, %v841_v10  ;;  %1822 = vmatprep.mubr.bf16.mxu0 %v3639_v0  ;;  %v897_v25 = vpop.f32.mrf.mxu0  ;;  %1750 = vperm.xlu0 %2375, %v1736_v41   ;;  %v2826_v1 = vld [vmem:[#allocation2 + $0x264] ss:$16 sps:$4 sm:$0xff]   ;;  %v2827_v35 = vld [vmem:[#allocation2 + $0x60] ss:$16 sps:$4 sm:$0xff]  }
 0x14d   :  { %v844_v23 = vpop.f32.mrf.mxu1  ;;  %1755 = vperm.xlu1 %2376, %v1737_v5   ;;  %1797 = vmatpush1.bf16.msra.mxu0 %v2823_v27  ;;  %v2829_v10 = vld [vmem:[#allocation2 + $0x44] ss:$16 sps:$4 sm:$0xff]   ;;  %v2831_v5 = vld [vmem:[#allocation2 + $0x40] ss:$16 sps:$4 sm:$0xff]  }
 0x14e   :  { %1850 = vmatpush1.bf16.msra.mxu1 %v2824_v32  ;;  %v845_v33 = vadd.f32 %v844_v23, %v3585_v21  ;;  %v3658_v28 = vadd.f32 %v895_v20, %v843_v2  ;;  %1798 = vmatprep.subr.bf16.mxu0 %v2825_v36  ;;  %v899_v37 = vpop.f32.mrf.mxu0  ;;  %v2830_v41 = vld [vmem:[#allocation2 + $0x244] ss:$16 sps:$4 sm:$0xff]   ;;  %v2836_v20 = vld [vmem:[#allocation2 + $0x220] ss:$16 sps:$4 sm:$0xff]   ;;  %v2842_v36 = vld [vmem:[#allocation2 + $0xec] ss:$16 sps:$4 sm:$0xff]  }
 0x14f   :  { %1851 = vmatprep.subr.bf16.mxu1 %v2826_v1  ;;  %v846_v34 = vpop.f32.mrf.mxu1  ;;  %v2834_v15 = vld [vmem:[#allocation2 + $0x224] ss:$16 sps:$4 sm:$0xff]   ;;  %v2839_v27 = vld [vmem:[#allocation2] ss:$16 sps:$4 sm:$0xff]  }
 0x150   :  { %v847_v43 = vadd.f32 %v846_v34, %v3585_v21  ;;  %v3661_v47 = vadd.f32 %v897_v25, %v845_v33  ;;  %v2835_v21 = vld [vmem:[#allocation2 + $0x20] ss:$16 sps:$4 sm:$0xff]   ;;  %v2837_v2 = vld [vmem:[#allocation2 + $0x4] ss:$16 sps:$4 sm:$0xff]   ;;  %v2844_v34 = vld [vmem:[#allocation2 + $0xe8] ss:$16 sps:$4 sm:$0xff]  }
 0x151   :  { %1799 = vmatpush1.bf16.msra.mxu0 %v2827_v35  ;;  %v2838_v23 = vld [vmem:[#allocation2 + $0x204] ss:$16 sps:$4 sm:$0xff]   ;;  %v2840_v32 = vld [vmem:[#allocation2 + $0x200] ss:$16 sps:$4 sm:$0xff]  }
 0x152   :  { %1852 = vmatpush1.bf16.msra.mxu1 %v2828_v7  ;;  %v3663_v8 = vadd.f32 %v899_v37, %v847_v43  ;;  %1800 = vmatprep.subr.bf16.mxu0 %v2829_v10  ;;  %v3665_v25 = vld [vmem:[#allocation5 + $0x68] ss:$12 sps:$4 sm:$0xff]   ;;  %v2843_v1 = vld [vmem:[#allocation2 + $0x1e0] ss:$16 sps:$4 sm:$0xff]   ;;  %v2846_v43 = vld [vmem:[#allocation2 + $0xcc] ss:$16 sps:$4 sm:$0xff]  }
 0x153   :  { %1853 = vmatprep.subr.bf16.mxu1 %v2830_v41  ;;  %v2841_v33 = vld [vmem:[#allocation2 + $0x1e4] ss:$16 sps:$4 sm:$0xff]   ;;  %v3669_v35 = vld [vmem:[#allocation5 + $0x80] ss:$12 sps:$4 sm:$0xff]   ;;  %v2848_v10 = vld [vmem:[#allocation2 + $0xc8] ss:$16 sps:$4 sm:$0xff]  }
 0x154   :  { %v2845_v37 = vld [vmem:[#allocation2 + $0x1c4] ss:$16 sps:$4 sm:$0xff]   ;;  %v2847_v7 = vld [vmem:[#allocation2 + $0x1c0] ss:$16 sps:$4 sm:$0xff]  }
 0x155   :  { %1801 = vmatpush1.bf16.msra.mxu0 %v2831_v5  ;;  %v2849_v41 = vld [vmem:[#allocation2 + $0x1a4] ss:$16 sps:$4 sm:$0xff]   ;;  %v2850_v5 = vld [vmem:[#allocation2 + $0xac] ss:$16 sps:$4 sm:$0xff]  }
 0x156   :  { %1854 = vmatpush1.bf16.msra.mxu1 %v2832_v13  ;;  %1802 = vmatprep.subr.bf16.mxu0 %v2833_v3  ;;  %v2851_v13 = vld [vmem:[#allocation2 + $0x1a0] ss:$16 sps:$4 sm:$0xff]   ;;  %v2852_v3 = vld [vmem:[#allocation2 + $0xa8] ss:$16 sps:$4 sm:$0xff]  }
 0x157   :  { %1855 = vmatprep.subr.bf16.mxu1 %v2834_v15  ;;  %v2853_v15 = vld [vmem:[#allocation2 + $0x184] ss:$16 sps:$4 sm:$0xff]  }
 0x159   :  { %1803 = vmatpush1.bf16.msra.mxu0 %v2835_v21  ;;  %v2854_v21 = vld [vmem:[#allocation2 + $0x8c] ss:$16 sps:$4 sm:$0xff]  }
 0x15a   :  { %1856 = vmatpush1.bf16.msra.mxu1 %v2836_v20  ;;  %1804 = vmatprep.subr.bf16.mxu0 %v2837_v2  ;;  %v2855_v20 = vld [vmem:[#allocation2 + $0x180] ss:$16 sps:$4 sm:$0xff]   ;;  %v2856_v2 = vld [vmem:[#allocation2 + $0x88] ss:$16 sps:$4 sm:$0xff]  }
 0x15b   :  { %1857 = vmatprep.subr.bf16.mxu1 %v2838_v23  ;;  %v2857_v23 = vld [vmem:[#allocation2 + $0x164] ss:$16 sps:$4 sm:$0xff]  }
 0x15d   :  { %1805 = vmatpush1.bf16.msra.mxu0 %v2839_v27  ;;  %v2858_v27 = vld [vmem:[#allocation2 + $0x6c] ss:$16 sps:$4 sm:$0xff]  }
 0x15e   :  { %1858 = vmatpush1.bf16.msra.mxu1 %v2840_v32  ;;  %1806 = vmatprep.subr.bf16.mxu0 %v2841_v33  ;;  %v2859_v32 = vld [vmem:[#allocation2 + $0x160] ss:$16 sps:$4 sm:$0xff]   ;;  %v2860_v33 = vld [vmem:[#allocation2 + $0x68] ss:$16 sps:$4 sm:$0xff]  }
 0x15f   :  { %1896 = vmatprep.subr.bf16.mxu1 %v2842_v36  ;;  %v2861_v36 = vld [vmem:[#allocation2 + $0x144] ss:$16 sps:$4 sm:$0xff]  }
 0x161   :  { %1876 = vmatmul.mubr.bf16.vlgmr.msra.gmra.mxu1 %v3665_v25  ;;  %1807 = vmatpush2.bf16.msra.mxu0 %v2843_v1  ;;  %v2862_v1 = vld [vmem:[#allocation2 + $0x4c] ss:$16 sps:$4 sm:$0xff]  }
 0x162   :  { %1897 = vmatpush1.bf16.msra.mxu1 %v2844_v34  ;;  %1808 = vmatprep.subr.bf16.mxu0 %v2845_v37  ;;  %v2863_v34 = vld [vmem:[#allocation2 + $0x140] ss:$16 sps:$4 sm:$0xff]   ;;  %v2864_v37 = vld [vmem:[#allocation2 + $0x48] ss:$16 sps:$4 sm:$0xff]  }
 0x163   :  { %1898 = vmatprep.subr.bf16.mxu1 %v2846_v43  ;;  %1885 = vmatprep.mubr.bf16.mxu1 %v4160_v59  ;;  %v2866_v43 = vld [vmem:[#allocation2 + $0x2c] ss:$16 sps:$4 sm:$0xff]  }
 0x165   :  { %1809 = vmatpush2.bf16.msra.mxu0 %v2847_v7  ;;  %v2867_v7 = vld [vmem:[#allocation2 + $0x120] ss:$16 sps:$4 sm:$0xff]  }
 0x166   :  { %1899 = vmatpush1.bf16.msra.mxu1 %v2848_v10  ;;  %1810 = vmatprep.subr.bf16.mxu0 %v2849_v41  ;;  %v2868_v10 = vld [vmem:[#allocation2 + $0x28] ss:$16 sps:$4 sm:$0xff]   ;;  %v2869_v41 = vld [vmem:[#allocation2 + $0x104] ss:$16 sps:$4 sm:$0xff]  }
 0x167   :  { %1900 = vmatprep.subr.bf16.mxu1 %v2850_v5  ;;  %v2870_v5 = vld [vmem:[#allocation2 + $0xc] ss:$16 sps:$4 sm:$0xff]  }
 0x169   :  { %1886 = vmatmul.mubr.bf16.gmra.mxu1 %v3669_v35  ;;  %1811 = vmatpush2.bf16.msra.mxu0 %v2851_v13  ;;  %v3673_v13 = vld [vmem:[#allocation5 + $0x60] ss:$12 sps:$4 sm:$0xff]  }
 0x16a   :  { %1901 = vmatpush1.bf16.msra.mxu1 %v2852_v3  ;;  %1812 = vmatprep.subr.bf16.mxu0 %v2853_v15  ;;  %v2871_v3 = vld [vmem:[#allocation2 + $0x100] ss:$16 sps:$4 sm:$0xff]   ;;  %v2872_v15 = vld [vmem:[#allocation2 + $0x8] ss:$16 sps:$4 sm:$0xff]  }
 0x16b   :  { %1902 = vmatprep.subr.bf16.mxu1 %v2854_v21  ;;  %1928 = vmatprep.mubr.bf16.mxu1 %v3639_v0  ;;  %v2865_v0 = vld [vmem:[#allocation2 + $0x124] ss:$16 sps:$4 sm:$0xff]   ;;  %v2873_v21 = vld [vmem:[#allocation2 + $0x1ec] ss:$16 sps:$4 sm:$0xff]  }
 0x16d   :  { %1813 = vmatpush2.bf16.msra.mxu0 %v2855_v20  ;;  %v2874_v20 = vld [vmem:[#allocation2 + $0x2ec] ss:$16 sps:$4 sm:$0xff]  }
 0x16e   :  { %1903 = vmatpush1.bf16.msra.mxu1 %v2856_v2  ;;  %1814 = vmatprep.subr.bf16.mxu0 %v2857_v23  ;;  %v3675_v2 = vld [vmem:[#allocation5 + $0x7c] ss:$12 sps:$4 sm:$0xff]  }
 0x16f   :  { %1904 = vmatprep.subr.bf16.mxu1 %v2858_v27  ;;  %v2875_v23 = vld [vmem:[#allocation2 + $0x1e8] ss:$16 sps:$4 sm:$0xff]  }
 0x170   :  { %v2876_v27 = vld [vmem:[#allocation2 + $0x2e8] ss:$16 sps:$4 sm:$0xff]  }
 0x171   :  { %1815 = vmatpush2.bf16.msra.mxu0 %v2859_v32 }
 0x172   :  { %1905 = vmatpush1.bf16.msra.mxu1 %v2860_v33  ;;  %1816 = vmatprep.subr.bf16.mxu0 %v2861_v36  ;;  %v2877_v33 = vld [vmem:[#allocation2 + $0x1cc] ss:$16 sps:$4 sm:$0xff]  }
 0x173   :  { %1906 = vmatprep.subr.bf16.mxu1 %v2862_v1  ;;  %v2878_v36 = vld [vmem:[#allocation2 + $0x2cc] ss:$16 sps:$4 sm:$0xff]   ;;  %v3681_v1 = vpop.f32.mrf.mxu1 }
 0x175   :  { %1817 = vmatpush2.bf16.msra.mxu0 %v2863_v34  ;;  %v3683_v34 = vld [vmem:[#allocation5 + $0x78] ss:$12 sps:$4 sm:$0xff]  }
 0x176   :  { %1907 = vmatpush1.bf16.msra.mxu1 %v2864_v37  ;;  %1818 = vmatprep.subr.bf16.mxu0 %v2865_v0  ;;  %v2879_v37 = vld [vmem:[#allocation2 + $0x1c8] ss:$16 sps:$4 sm:$0xff]  }
 0x177   :  { %1908 = vmatprep.subr.bf16.mxu1 %v2866_v43  ;;  %v3690_v43 = vpop.f32.mrf.mxu1 }
 0x179   :  { %1819 = vmatpush2.bf16.msra.mxu0 %v2867_v7 }
 0x17a   :  { %1909 = vmatpush1.bf16.msra.mxu1 %v2868_v10  ;;  %1820 = vmatprep.subr.bf16.mxu0 %v2869_v41 }
 0x17b   :  { %1910 = vmatprep.subr.bf16.mxu1 %v2870_v5 }
 0x17d   :  { %1821 = vmatpush2.bf16.msra.mxu0 %v2871_v3 }
 0x17e   :  { %1911 = vmatpush1.bf16.msra.mxu1 %v2872_v15  ;;  %1949 = vmatprep.subr.bf16.mxu0 %v2874_v20 }
 0x17f   :  { %1912 = vmatprep.subr.bf16.mxu1 %v2873_v21 }
 0x180   :  { %1823 = vmatmul.mubr.bf16.vlgmr.msra.gmra.mxu0 %v3673_v13  ;;  %v3678_v32 = vpop.f32.mrf.mxu0 }
 0x181   :  { %1950 = vmatpush1.bf16.msra.mxu0 %v2876_v27  ;;  %1832 = vmatprep.mubr.bf16.mxu0 %v3675_v2 }
 0x182   :  { %1913 = vmatpush2.bf16.msra.mxu1 %v2875_v23  ;;  %1951 = vmatprep.subr.bf16.mxu0 %v2878_v36  ;;  %v3686_v0 = vpop.f32.mrf.mxu0 }
 0x183   :  { %1914 = vmatprep.subr.bf16.mxu1 %v2877_v33 }
 0x184   :  { %v3695_v7 = vpop.f32.mrf.mxu0 }
 0x185   :  { %1952 = vmatpush1.bf16.msra.mxu0 %v4238_v9  ;;  %v2300_v9 = vmul.f32 -1.442695, %v3622_v16 }
 0x186   :  { %1915 = vmatpush2.bf16.msra.mxu1 %v2879_v37  ;;  %1953 = vmatprep.subr.bf16.mxu0 %v4240_v12  ;;  %v2301_v12 = vmul.f32 -1.442695, %v3630_v24 }
 0x187   :  { %1916 = vmatprep.subr.bf16.mxu1 %v4239_v11  ;;  %v3701_v11 = vpop.f32.mrf.mxu1  ;;  %2553 = vpow2.f32 %v2300_v9 }
 0x188   :  { %1833 = vmatmul.mubr.bf16.gmra.mxu0 %v3683_v34  ;;  %2555 = vpow2.f32 %v2301_v12 }
 0x189   :  { %1954 = vmatpush1.bf16.msra.mxu0 %v4242_v19  ;;  %1981 = vmatprep.mubr.bf16.mxu0 %v4160_v59  ;;  %v3711_v19 = vpop.f32.mrf.mxu1 }
 0x18a   :  { %1917 = vmatpush2.bf16.msra.mxu1 %v4241_v18  ;;  %1955 = vmatprep.subr.bf16.mxu0 %v4196_v61  ;;  %v3706_v18 = vpop.f32.mrf.mxu0  ;;  %v2304_v61 = vmul.f32 -1.442695, %v3636_v42 }
 0x18b   :  { %1918 = vmatprep.subr.bf16.mxu1 %v4243_v22 }
 0x18c   :  { %v3716_v22 = vpop.f32.mrf.mxu0  ;;  %2557 = vpow2.f32 %v2304_v61 }
 0x18d   :  { %1956 = vmatpush1.bf16.msra.mxu0 %v4198_v53  ;;  %v2305_v53 = vmul.f32 -1.442695, %v3643_v4 }
 0x18e   :  { %1919 = vmatpush2.bf16.msra.mxu1 %v4244_v29  ;;  %1957 = vmatprep.subr.bf16.mxu0 %v4200_v45  ;;  %v3718_v29 = vpop.f32.mrf.mxu1  ;;  %v2308_v45 = vmul.f32 -1.442695, %v3653_v30 }
 0x18f   :  { %1920 = vmatprep.subr.bf16.mxu1 %v4199_v44  ;;  %v3722_v44 = vpop.permute.xlu0 %1320  ;;  %2559 = vpow2.f32 %v2305_v53 }
 0x190   :  { %v3730_v16 = vpop.f32.mrf.mxu1  ;;  %2561 = vpow2.f32 %v2308_v45 }
 0x191   :  { %1958 = vmatpush1.bf16.msra.mxu0 %v4202_v57  ;;  %v3728_v57 = vpop.f32.mrf.mxu0 }
 0x192   :  { %1921 = vmatpush2.bf16.msra.mxu1 %v4201_v46  ;;  %1959 = vmatprep.subr.bf16.mxu0 %v4204_v60  ;;  %v2309_v46 = vmul.f32 -1.442695, %v3658_v28  ;;  %v3734_v60 = vpop.permute.xlu1 %1325  ;;  %v3744_v42 = vpop.f32.mrf.mxu1 }
 0x193   :  { %1922 = vmatprep.subr.bf16.mxu1 %v4245_v40  ;;  %v2312_v40 = vmul.f32 -1.442695, %v3661_v47  ;;  %v3737_v24 = vpop.permute.xlu0 %1330 }
 0x194   :  { %2563 = vpow2.f32 %v2309_v46 }
 0x195   :  { %1960 = vmatpush1.bf16.msra.mxu0 %v3305_v49  ;;  %v2313_v49 = vmul.f32 -1.442695, %v3663_v8  ;;  %2565 = vpow2.f32 %v2312_v40 }
 0x196   :  { %1923 = vmatpush2.bf16.msra.mxu1 %v4205_v54  ;;  %1961 = vmatprep.subr.bf16.mxu0 %v4206_v62  ;;  %v3742_v54 = vpop.f32.mrf.mxu0  ;;  %v3748_v62 = vpop.permute.xlu1 %1335 }
 0x197   :  { %1924 = vmatprep.subr.bf16.mxu1 %v3309_v48  ;;  %v2554_v48 = vpop.eup %2553  ;;  %2567 = vpow2.f32 %v2313_v49  ;;  %v3756_v30 = vpop.permute.xlu0 %1012 }
 0x198   :  { %v2556_v4 = vpop.eup %2555  ;;  %v952_v28 = vadd.f32 1.0, %v2554_v48 }
 0x199   :  { %1962 = vmatpush1.bf16.msra.mxu0 %v3317_v63  ;;  %v3754_v63 = vpop.f32.mrf.mxu1 }
 0x19a   :  { %1925 = vmatpush2.bf16.msra.mxu1 %v3315_v51  ;;  %1963 = vmatprep.subr.bf16.mxu0 %v3323_v58  ;;  %v3752_v51 = vpop.f32.mrf.mxu0  ;;  %v2558_v58 = vpop.eup %2557  ;;  %2569 = vrcp.f32 %v952_v28 }
 0x19b   :  { %1926 = vmatprep.subr.bf16.mxu1 %v3321_v56  ;;  %v3763_v5 = vpop.permute.xlu1 %1017  ;;  %v3767_v37 = vpop.permute.xlu0 %1022 }
 0x19c   :  { %v2560_v41 = vpop.eup %2559 }
 0x19d   :  { %1964 = vmatpush1.bf16.msra.mxu0 %v4207_v55  ;;  %v953_v55 = vadd.f32 1.0, %v2556_v4  ;;  %v2562_v20 = vpop.eup %2561 }
 0x19e   :  { %1927 = vmatpush2.bf16.msra.mxu1 %v3327_v52  ;;  %v960_v61 = vadd.f32 1.0, %v2562_v20 }
 0x1a0   :  { %v1255_v47 = vpop.f32.mrf.mxu0  ;;  %1982 = vmatmul.mubr.bf16.vlgmr.msra.gmra.mxu0 %v3665_v25 }
 0x1a1   :  { %v1202_v56 = vpop.f32.mrf.mxu1  ;;  %1929 = vmatmul.mubr.bf16.vlgmr.msra.gmra.mxu1 %v3673_v13  ;;  %1991 = vmatprep.mubr.bf16.mxu0 %v4160_v59  ;;  %v956_v13 = vadd.f32 1.0, %v2558_v58  ;;  %v957_v59 = vadd.f32 1.0, %v2560_v41  ;;  %v2564_v36 = vpop.eup %2563 }
 0x1a2   :  { %v1203_v52 = vadd.f32 %v1202_v56, %v3756_v30  ;;  %1938 = vmatprep.mubr.bf16.mxu1 %v3675_v2  ;;  %v1257_v10 = vpop.f32.mrf.mxu0  ;;  %v2566_v46 = vpop.eup %2565  ;;  %v961_v48 = vadd.f32 1.0, %v2564_v36 }
 0x1a3   :  { %v1204_v8 = vpop.f32.mrf.mxu1 }
 0x1a4   :  { %v1256_v3 = vadd.f32 %v1255_v47, %v1203_v52  ;;  %v1205_v15 = vadd.f32 %v1204_v8, %v3756_v30  ;;  %v1259_v25 = vpop.f32.mrf.mxu0  ;;  %v2568_v56 = vpop.eup %2567 }
 0x1a5   :  { %v1206_v21 = vpop.f32.mrf.mxu1  ;;  %v3773_v47 = vpop.permute.xlu1 %1027  ;;  %v965_v41 = vadd.f32 1.0, %v2568_v56 }
 0x1a6   :  { %2571 = vtanh.f32 %v1256_v3  ;;  %v1258_v23 = vadd.f32 %v1257_v10, %v1205_v15  ;;  %v1207_v2 = vadd.f32 %v1206_v21, %v3763_v5  ;;  %v1261_v33 = vpop.f32.mrf.mxu0 }
 0x1a7   :  { %2573 = vrcp.f32 %v953_v55  ;;  %v1208_v27 = vpop.f32.mrf.mxu1 }
 0x1a8   :  { %2575 = vtanh.f32 %v1258_v23  ;;  %v1260_v9 = vadd.f32 %v1259_v25, %v1207_v2  ;;  %v1209_v12 = vadd.f32 %v1208_v27, %v3763_v5  ;;  %1992 = vmatmul.mubr.bf16.gmra.mxu0 %v3669_v35  ;;  %v1265_v45 = vpop.f32.mrf.mxu0  ;;  %v2570_v25 = vpop.eup %2569 }
 0x1a9   :  { %2577 = vrcp.f32 %v956_v13  ;;  %v1212_v53 = vpop.f32.mrf.mxu1  ;;  %1939 = vmatmul.mubr.bf16.gmra.mxu1 %v3683_v34  ;;  %v964_v34 = vadd.f32 1.0, %v2566_v46 }
 0x1aa   :  { %2579 = vtanh.f32 %v1260_v9  ;;  %v1262_v40 = vadd.f32 %v1261_v33, %v1209_v12  ;;  %v1213_v49 = vadd.f32 %v1212_v53, %v3767_v37  ;;  %v1267_v28 = vpop.f32.mrf.mxu0 }
 0x1ab   :  { %2581 = vrcp.f32 %v957_v59  ;;  %v1214_v4 = vpop.f32.mrf.mxu1 }
 0x1ac   :  { %2583 = vtanh.f32 %v1262_v40  ;;  %v1215_v58 = vadd.f32 %v1214_v4, %v3767_v37  ;;  %v1266_v52 = vadd.f32 %v1265_v45, %v1213_v49  ;;  %v1269_v55 = vpop.f32.mrf.mxu0 }
 0x1ad   :  { %2585 = vrcp.f32 %v960_v61  ;;  %v1216_v35 = vpop.f32.mrf.mxu1 }
 0x1ae   :  { %2587 = vtanh.f32 %v1266_v52  ;;  %v1217_v8 = vadd.f32 %v1216_v35, %v3773_v47  ;;  %v1268_v10 = vadd.f32 %v1267_v28, %v1215_v58  ;;  %v1271_v15 = vpop.f32.mrf.mxu0 }
 0x1af   :  { %2589 = vrcp.f32 %v961_v48  ;;  %v1218_v3 = vpop.f32.mrf.mxu1 }
 0x1b0   :  { %2591 = vtanh.f32 %v1268_v10  ;;  %v1219_v13 = vadd.f32 %v1218_v3, %v3773_v47  ;;  %v1270_v21 = vadd.f32 %v1269_v55, %v1217_v8  ;;  %v2298_v8 = vmul.f32 -1.442695, %v3561_v50 }
 0x1b1   :  { %2593 = vrcp.f32 %v964_v34  ;;  %v2299_v10 = vmul.f32 -1.442695, %v3569_v6  ;;  %v2303_v3 = vmul.f32 -1.442695, %v3580_v17  ;;  %v2311_v17 = vmul.f32 -1.442695, %v3605_v39 }
 0x1b2   :  { %2595 = vtanh.f32 %v1270_v21  ;;  %v1272_v20 = vadd.f32 %v1271_v15, %v1219_v13  ;;  %v2306_v13 = vmul.f32 -1.442695, %v3590_v26  ;;  %v2307_v21 = vmul.f32 -1.442695, %v3595_v31 }
 0x1b3   :  { %v2572_v23 = vpop.eup %2571  ;;  %2597 = vrcp.f32 %v965_v41  ;;  %v2302_v41 = vmul.f32 -1.442695, %v3576_v14 }
 0x1b4   :  { %v2574_v2 = vpop.eup %2573  ;;  %v3778_v59 = vmul.f32 %v2572_v23, %v2570_v25  ;;  %2599 = vtanh.f32 %v1272_v20  ;;  %v2310_v20 = vmul.f32 -1.442695, %v3601_v38 }
 0x1b5   :  { %v2576_v27 = vpop.eup %2575  ;;  %2601 = vpow2.f32 %v2298_v8 }
 0x1b6   :  { %v2578_v33 = vpop.eup %2577  ;;  %v3780_v36 = vmul.f32 %v2576_v27, %v2574_v2  ;;  %2603 = vpow2.f32 %v2299_v10 }
 0x1b7   :  { %v2580_v9 = vpop.eup %2579  ;;  %2605 = vpow2.f32 %v2302_v41 }
 0x1b8   :  { %v2582_v12 = vpop.eup %2581  ;;  %v3782_v61 = vmul.f32 %v2580_v9, %v2578_v33  ;;  %2607 = vpow2.f32 %v2303_v3 }
 0x1b9   :  { %v2584_v53 = vpop.eup %2583  ;;  %2609 = vpow2.f32 %v2306_v13 }
 0x1ba   :  { %v2586_v45 = vpop.eup %2585  ;;  %v3784_v46 = vmul.f32 %v2584_v53, %v2582_v12  ;;  %2611 = vpow2.f32 %v2307_v21 }
 0x1bb   :  { %v2588_v40 = vpop.eup %2587  ;;  %2613 = vpow2.f32 %v2310_v20 }
 0x1bc   :  { %v2590_v49 = vpop.eup %2589  ;;  %v3786_v48 = vmul.f32 %v2588_v40, %v2586_v45  ;;  %2615 = vpow2.f32 %v2311_v17 }
 0x1bd   :  { %v2592_v4 = vpop.eup %2591 }
 0x1be   :  { %v2594_v28 = vpop.eup %2593  ;;  %v3788_v56 = vmul.f32 %v2592_v4, %v2590_v49 }
 0x1bf   :  { %v2596_v58 = vpop.eup %2595 }
 0x1c0   :  { %v2598_v52 = vpop.eup %2597  ;;  %v3790_v34 = vmul.f32 %v2596_v58, %v2594_v28 }
 0x1c1   :  { %v2600_v35 = vpop.eup %2599  ;;  %v1457_v15 = vpop.f32.mrf.mxu1 }
 0x1c2   :  { %v3792_v55 = vmul.f32 %v2600_v35, %v2598_v52  ;;  %v2602_v6 = vpop.eup %2601 }
 0x1c3   :  { %v1459_v25 = vpop.f32.mrf.mxu1  ;;  %v2604_v2 = vpop.eup %2603  ;;  %v950_v33 = vadd.f32 1.0, %v2602_v6 }
 0x1c4   :  { %v2606_v12 = vpop.eup %2605  ;;  %v951_v45 = vadd.f32 1.0, %v2604_v2 }
 0x1c5   :  { %v1461_v50 = vpop.f32.mrf.mxu1  ;;  %v2608_v40 = vpop.eup %2607  ;;  %2617 = vrcp.f32 %v950_v33  ;;  %v954_v58 = vadd.f32 1.0, %v2606_v12  ;;  %v1097_v12 = vadd.f32 %v3678_v32, %v3756_v30 }
 0x1c6   :  { %v2610_v35 = vpop.eup %2609  ;;  %v955_v3 = vadd.f32 1.0, %v2608_v40  ;;  %v1099_v40 = vadd.f32 %v3686_v0, %v3756_v30  ;;  %v1103_v30 = vadd.f32 %v3706_v18, %v3763_v5  ;;  %v1109_v18 = vadd.f32 %v3728_v57, %v3767_v37 }
 0x1c7   :  { %v1463_v23 = vpop.f32.mrf.mxu1  ;;  %v2612_v13 = vpop.eup %2611  ;;  %v958_v6 = vadd.f32 1.0, %v2610_v35  ;;  %v1150_v32 = vadd.f32 %v3681_v1, %v1097_v12  ;;  %v1113_v57 = vadd.f32 %v3752_v51, %v3773_v47 }
 0x1c8   :  { %v2614_v17 = vpop.eup %2613  ;;  %v1152_v0 = vadd.f32 %v3690_v43, %v1099_v40  ;;  %v1156_v43 = vadd.f32 %v3711_v19, %v1103_v30  ;;  %v1162_v19 = vadd.f32 %v3730_v16, %v1109_v18 }
 0x1c9   :  { %v1467_v9 = vpop.f32.mrf.mxu1 }
 0x1cb   :  { %v1469_v52 = vpop.f32.mrf.mxu1 }
 0x1cd   :  { %v1471_v2 = vpop.f32.mrf.mxu1 }
 0x1e0   :  { %v1404_v14 = vpop.f32.mrf.mxu0 }
 0x1e1   :  { %v1405_v27 = vadd.f32 %v1404_v14, %v3722_v44 }
 0x1e2   :  { %v1406_v26 = vpop.f32.mrf.mxu0 }
 0x1e3   :  { %v1458_v31 = vadd.f32 %v1457_v15, %v1405_v27  ;;  %v1407_v53 = vadd.f32 %v1406_v26, %v3722_v44  ;;  %v959_v26 = vadd.f32 1.0, %v2612_v13 }
 0x1e4   :  { %v1408_v38 = vpop.f32.mrf.mxu0 }
 0x1e5   :  { %v2326_v49 = vmul.f32 -1.442695, %v1458_v31  ;;  %v1460_v4 = vadd.f32 %v1459_v25, %v1407_v53  ;;  %v1409_v28 = vadd.f32 %v1408_v38, %v3734_v60  ;;  %v962_v38 = vadd.f32 1.0, %v2614_v17 }
 0x1e6   :  { %v1410_v39 = vpop.f32.mrf.mxu0 }
 0x1e7   :  { %2619 = vpow2.f32 %v2326_v49  ;;  %v2327_v8 = vmul.f32 -1.442695, %v1460_v4  ;;  %v1462_v10 = vadd.f32 %v1461_v50, %v1409_v28  ;;  %v1411_v41 = vadd.f32 %v1410_v39, %v3734_v60  ;;  %v1473_v4 = vpop.f32.mrf.mxu1 }
 0x1e8   :  { %2621 = vrcp.f32 %v951_v45  ;;  %v1414_v15 = vpop.f32.mrf.mxu0  ;;  %v1101_v39 = vadd.f32 %v3695_v7, %v3763_v5  ;;  %v1107_v7 = vadd.f32 %v3716_v22, %v3767_v37  ;;  %v1111_v22 = vadd.f32 %v3742_v54, %v3773_v47 }
 0x1e9   :  { %2623 = vpow2.f32 %v2327_v8  ;;  %v2330_v21 = vmul.f32 -1.442695, %v1462_v10  ;;  %v1464_v20 = vadd.f32 %v1463_v23, %v1411_v41  ;;  %v1415_v25 = vadd.f32 %v1414_v15, %v3737_v24  ;;  %v2616_v8 = vpop.eup %2615 }
 0x1ea   :  { %2625 = vrcp.f32 %v954_v58  ;;  %v1416_v14 = vpop.f32.mrf.mxu0  ;;  %v3820_v10 = vpop.eup %2617  ;;  %v1154_v1 = vadd.f32 %v3701_v11, %v1101_v39  ;;  %v1160_v11 = vadd.f32 %v3718_v29, %v1107_v7  ;;  %v1164_v29 = vadd.f32 %v3744_v42, %v1111_v22  ;;  %v1683_v22 = vld [vmem:[%s4022_s3 + $0x28] sm:$0xff] }
 0x1eb   :  { %2627 = vpow2.f32 %v2330_v21  ;;  %v2331_v27 = vmul.f32 -1.442695, %v1464_v20  ;;  %v1417_v50 = vadd.f32 %v1416_v14, %v3737_v24  ;;  %v1468_v33 = vadd.f32 %v1467_v9, %v1415_v25 }
 0x1ec   :  { %2629 = vrcp.f32 %v955_v3  ;;  %v1418_v31 = vpop.f32.mrf.mxu0  ;;  %v963_v12 = vadd.f32 1.0, %v2616_v8 }
 0x1ed   :  { %2631 = vpow2.f32 %v2331_v27  ;;  %v2334_v23 = vmul.f32 -1.442695, %v1468_v33  ;;  %v1419_v53 = vadd.f32 %v1418_v31, %v3748_v62  ;;  %v1470_v45 = vadd.f32 %v1469_v52, %v1417_v50 }
 0x1ee   :  { %2633 = vrcp.f32 %v958_v6  ;;  %v1420_v49 = vpop.f32.mrf.mxu0 }
 0x1ef   :  { %2635 = vpow2.f32 %v2334_v23  ;;  %v2335_v9 = vmul.f32 -1.442695, %v1470_v45  ;;  %v1421_v28 = vadd.f32 %v1420_v49, %v3748_v62  ;;  %v1472_v58 = vadd.f32 %v1471_v2, %v1419_v53 }
 0x1f0   :  { %2637 = vrcp.f32 %v959_v26  ;;  %v1166_v26 = vadd.f32 %v3754_v63, %v1113_v57  ;;  %v1678_v63 = vld [vmem:[%s4022_s3] sm:$0xff] }
 0x1f1   :  { %2639 = vpow2.f32 %v2335_v9  ;;  %v2338_v52 = vmul.f32 -1.442695, %v1472_v58  ;;  %v1474_v35 = vadd.f32 %v1473_v4, %v1421_v28 }
 0x1f2   :  { %2641 = vrcp.f32 %v962_v38 }
 0x1f3   :  { %2643 = vpow2.f32 %v2338_v52  ;;  %v2339_v41 = vmul.f32 -1.442695, %v1474_v35  ;;  %v1679_v52 = vld [vmem:[%s4022_s3 + $0x8] sm:$0xff] }
 0x1f4   :  { %v2620_v3 = vpop.eup %2619  ;;  %2645 = vtanh.f32 %v1150_v32 }
 0x1f5   :  { %v3825_v15 = vpop.eup %2621  ;;  %v1630_v13 = vadd.f32 1.0, %v2620_v3  ;;  %2647 = vpow2.f32 %v2339_v41 }
 0x1f6   :  { %v2624_v21 = vpop.eup %2623  ;;  %2649 = vtanh.f32 %v1152_v0 }
 0x1f7   :  { %v3830_v5 = vpop.eup %2625  ;;  %2651 = vrcp.f32 %v1630_v13  ;;  %v1631_v20 = vadd.f32 1.0, %v2624_v21 }
 0x1f8   :  { %v2628_v25 = vpop.eup %2627  ;;  %2653 = vtanh.f32 %v1154_v1 }
 0x1f9   :  { %v3835_v6 = vpop.eup %2629  ;;  %2655 = vrcp.f32 %v1631_v20  ;;  %v1634_v14 = vadd.f32 1.0, %v2628_v25 }
 0x1fa   :  { %v2632_v2 = vpop.eup %2631  ;;  %2657 = vtanh.f32 %v1156_v43 }
 0x1fb   :  { %v3840_v37 = vpop.eup %2633  ;;  %2659 = vrcp.f32 %v1634_v14  ;;  %v1635_v17 = vadd.f32 1.0, %v2632_v2 }
 0x1fc   :  { %v2636_v27 = vpop.eup %2635  ;;  %2661 = vtanh.f32 %v1160_v11 }
 0x1fd   :  { %v3843_v54 = vpop.eup %2637  ;;  %2663 = vrcp.f32 %v1635_v17  ;;  %v1638_v50 = vadd.f32 1.0, %v2636_v27 }
 0x1fe   :  { %v2640_v33 = vpop.eup %2639  ;;  %2665 = vtanh.f32 %v1162_v19 }
 0x1ff   :  { %v3846_v16 = vpop.eup %2641  ;;  %2667 = vrcp.f32 %v1638_v50  ;;  %v1639_v51 = vadd.f32 1.0, %v2640_v33 }
 0x200   :  { %v2644_v47 = vpop.eup %2643  ;;  %2669 = vtanh.f32 %v1164_v29  ;;  %v1563_v23 = vpop.f32.mrf.mxu0 }
 0x201   :  { %v1510_v31 = vpop.f32.mrf.mxu1  ;;  %v2646_v53 = vpop.eup %2645  ;;  %2671 = vrcp.f32 %v1639_v51  ;;  %v1642_v42 = vadd.f32 1.0, %v2644_v47 }
 0x202   :  { %v1511_v45 = vadd.f32 %v1510_v31, %v3722_v44  ;;  %v2648_v38 = vpop.eup %2647  ;;  %2673 = vtanh.f32 %v1166_v26  ;;  %v1565_v49 = vpop.f32.mrf.mxu0  ;;  %v1290_v39 = vmul.f32 %v2646_v53, %v3820_v10  ;;  %v1686_v26 = vld [vmem:[%s4022_s3 + $0x40] sm:$0xff] }
 0x203   :  { %v1512_v40 = vpop.f32.mrf.mxu1  ;;  %v2650_v4 = vpop.eup %2649  ;;  %2675 = vrcp.f32 %v1642_v42  ;;  %v1643_v9 = vadd.f32 1.0, %v2648_v38  ;;  %v1687_v38 = vld [vmem:[%s4022_s3 + $0x48] sm:$0xff] }
 0x204   :  { %v1564_v28 = vadd.f32 %v1563_v23, %v1511_v45  ;;  %v1513_v58 = vadd.f32 %v1512_v40, %v3722_v44  ;;  %v2652_v32 = vpop.eup %2651  ;;  %2677 = vrcp.f32 %v963_v12  ;;  %v1567_v8 = vpop.f32.mrf.mxu0  ;;  %v1291_v7 = vmul.f32 %v2650_v4, %v3825_v15  ;;  %v1682_v44 = vld [vmem:[%s4022_s3 + $0x20] sm:$0xff] }
 0x205   :  { %v1514_v35 = vpop.f32.mrf.mxu1  ;;  %v2654_v0 = vpop.eup %2653  ;;  %v1694_v30 = vmul.f32 %v2652_v32, %v1678_v63  ;;  %2679 = vrcp.f32 %v1643_v9 }
 0x206   :  { %v2328_v41 = vmul.f32 -1.442695, %v1564_v28  ;;  %v1566_v3 = vadd.f32 %v1565_v49, %v1513_v58  ;;  %v2656_v1 = vpop.eup %2655  ;;  %v1515_v10 = vadd.f32 %v1514_v35, %v3734_v60  ;;  %v1569_v21 = vpop.f32.mrf.mxu0  ;;  %v1294_v17 = vmul.f32 %v2654_v0, %v3830_v5 }
 0x207   :  { %v1516_v13 = vpop.f32.mrf.mxu1  ;;  %v2658_v43 = vpop.eup %2657  ;;  %v3862_v18 = vadd.f32 %v1694_v30, %v1290_v39  ;;  %v1695_v20 = vmul.f32 %v2656_v1, %v1679_v52  ;;  %v1690_v39 = vld [vmem:[%s4022_s3 + $0x60] sm:$0xff] }
 0x208   :  { %2681 = vpow2.f32 %v2328_v41  ;;  %v2329_v25 = vmul.f32 -1.442695, %v1566_v3  ;;  %v2660_v11 = vpop.eup %2659  ;;  %v1568_v15 = vadd.f32 %v1567_v8, %v1515_v10  ;;  %v1517_v14 = vadd.f32 %v1516_v13, %v3734_v60  ;;  %v1573_v19 = vpop.f32.mrf.mxu0 }
 0x209   :  { %v1520_v2 = vpop.f32.mrf.mxu1  ;;  %v2662_v57 = vpop.eup %2661  ;;  %2130 = vst [vmem:[#allocation8] sm:$0xff] %v3862_v18  ;;  %v3870_v27 = vadd.f32 %v1695_v20, %v1291_v7  ;;  %v1698_v29 = vmul.f32 %v2660_v11, %v1682_v44  ;;  %v1295_v5 = vmul.f32 %v2658_v43, %v3835_v6  ;;  %v1691_v44 = vld [vmem:[%s4022_s3 + $0x68] sm:$0xff] }
 0x20a   :  { %v1521_v50 = vadd.f32 %v1520_v2, %v3737_v24  ;;  %v2664_v33 = vpop.eup %2663  ;;  %2683 = vpow2.f32 %v2329_v25  ;;  %v2332_v51 = vmul.f32 -1.442695, %v1568_v15  ;;  %v1570_v60 = vadd.f32 %v1569_v21, %v1517_v14  ;;  %v1575_v12 = vpop.f32.mrf.mxu0 }
 0x20b   :  { %v1522_v47 = vpop.f32.mrf.mxu1  ;;  %v2666_v31 = vpop.eup %2665  ;;  %2131 = vst [vmem:[#allocation8 + $0x8] sm:$0xff] %v3870_v27  ;;  %v3878_v23 = vadd.f32 %v1698_v29, %v1294_v17  ;;  %v1699_v53 = vmul.f32 %v2664_v33, %v1683_v22  ;;  %v1298_v6 = vmul.f32 %v2662_v57, %v3840_v37 }
 0x20c   :  { %v1523_v42 = vadd.f32 %v1522_v47, %v3737_v24  ;;  %v2668_v45 = vpop.eup %2667  ;;  %2685 = vpow2.f32 %v2332_v51  ;;  %v2333_v63 = vmul.f32 -1.442695, %v1570_v60  ;;  %v1574_v40 = vadd.f32 %v1573_v19, %v1521_v50  ;;  %v1577_v4 = vpop.f32.mrf.mxu0 }
 0x20d   :  { %v1524_v49 = vpop.f32.mrf.mxu1  ;;  %v2670_v9 = vpop.eup %2669  ;;  %2134 = vst [vmem:[#allocation8 + $0x20] sm:$0xff] %v3878_v23  ;;  %v3886_v28 = vadd.f32 %v1699_v53, %v1295_v5  ;;  %v1702_v58 = vmul.f32 %v2668_v45, %v1686_v26  ;;  %v1299_v37 = vmul.f32 %v2666_v31, %v3843_v54  ;;  %v1680_v45 = vld [vmem:[%s4022_s3 + $0x10] sm:$0xff] }
 0x20e   :  { %v1525_v24 = vadd.f32 %v1524_v49, %v3748_v62  ;;  %v2672_v32 = vpop.eup %2671  ;;  %2687 = vpow2.f32 %v2333_v63  ;;  %v2336_v52 = vmul.f32 -1.442695, %v1574_v40  ;;  %v1576_v35 = vadd.f32 %v1575_v12, %v1523_v42  ;;  %v1579_v0 = vpop.f32.mrf.mxu0  ;;  %v1681_v40 = vld [vmem:[%s4022_s3 + $0x18] sm:$0xff] }
 0x20f   :  { %v1526_v8 = vpop.f32.mrf.mxu1  ;;  %v2674_v30 = vpop.eup %2673  ;;  %2135 = vst [vmem:[#allocation8 + $0x28] sm:$0xff] %v3886_v28  ;;  %v3894_v41 = vadd.f32 %v1702_v58, %v1298_v6  ;;  %v1703_v3 = vmul.f32 %v2672_v32, %v1687_v38  ;;  %v1302_v43 = vmul.f32 %v2670_v9, %v3846_v16  ;;  %v1684_v9 = vld [vmem:[%s4022_s3 + $0x30] sm:$0xff]  ;;  %v1685_v32 = vld [vmem:[%s4022_s3 + $0x38] sm:$0xff] }
 0x210   :  { %v1527_v1 = vadd.f32 %v1526_v8, %v3748_v62  ;;  %v2676_v7 = vpop.eup %2675  ;;  %2689 = vpow2.f32 %v2336_v52  ;;  %v2337_v10 = vmul.f32 -1.442695, %v1576_v35  ;;  %v1578_v13 = vadd.f32 %v1577_v4, %v1525_v24  ;;  %v1688_v8 = vld [vmem:[%s4022_s3 + $0x50] sm:$0xff] }
 0x211   :  { %v2678_v21 = vpop.eup %2677  ;;  %2138 = vst [vmem:[#allocation8 + $0x40] sm:$0xff] %v3894_v41  ;;  %v3902_v54 = vadd.f32 %v1703_v3, %v1299_v37  ;;  %v1706_v20 = vmul.f32 %v2676_v7, %v1690_v39  ;;  %v1689_v37 = vld [vmem:[%s4022_s3 + $0x58] sm:$0xff]  ;;  %v1692_v7 = vld [vmem:[%s4022_s3 + $0x70] sm:$0xff] }
 0x212   :  { %v1580_v25 = vadd.f32 %v1579_v0, %v1527_v1  ;;  %v2680_v11 = vpop.eup %2679  ;;  %2691 = vpow2.f32 %v2337_v10  ;;  %v2340_v62 = vmul.f32 -1.442695, %v1578_v13  ;;  %v1303_v22 = vmul.f32 %v2678_v21, %v2674_v30  ;;  %v1693_v13 = vld [vmem:[%s4022_s3 + $0x78] sm:$0xff]  ;;  %s2920_s3 = scalar_lea.vmem %s2180_s14, 2048 }
 0x213   :  { %2139 = vst [vmem:[#allocation8 + $0x48] sm:$0xff] %v3902_v54  ;;  %v3905_v15 = vadd.f32 %v1706_v20, %v1302_v43  ;;  %v1707_v14 = vmul.f32 %v2680_v11, %v1691_v44  ;;  %p2921_p10 = scmp.ne.s32.totalorder %s2180_s14, %s2920_s3  ;;  %p2926_p12 = scmp.lt.s32.totalorder %s2920_s3, %s2920_s3 }
 0x214   :  { %v2341_v2 = vmul.f32 -1.442695, %v1580_v25  ;;  %2693 = vpow2.f32 %v2340_v62 }
 0x215   :  { %v2682_v19 = vpop.eup %2681  ;;  %2142 = vst [vmem:[#allocation8 + $0x60] sm:$0xff] %v3905_v15  ;;  %v3908_v16 = vadd.f32 %v1707_v14, %v1303_v22  ;;  %p2927_p13 = por %p2926_p12, %p2925_p11 }
 0x216   :  { %v1632_v57 = vadd.f32 1.0, %v2682_v19  ;;  %2695 = vpow2.f32 %v2341_v2 }
 0x217   :  { %v2684_v17 = vpop.eup %2683  ;;  %2143 = vst [vmem:[#allocation8 + $0x68] sm:$0xff] %v3908_v16  ;;  %p2928_p0 = pnand %p2927_p13, %p2921_p10 }
 0x218   :  { %2697 = vrcp.f32 %v1632_v57  ;;  %v1633_v29 = vadd.f32 1.0, %v2684_v17 }
 0x219   :  { %v2686_v50 = vpop.eup %2685 }
 0x21a   :  { %2699 = vrcp.f32 %v1633_v29  ;;  %v1636_v33 = vadd.f32 1.0, %v2686_v50 }
 0x21b   :  { %v2688_v26 = vpop.eup %2687 }
 0x21c   :  { %2701 = vrcp.f32 %v1636_v33  ;;  %v1637_v51 = vadd.f32 1.0, %v2688_v26 }
 0x21d   :  { %v2690_v60 = vpop.eup %2689 }
 0x21e   :  { %2703 = vrcp.f32 %v1637_v51  ;;  %v1640_v47 = vadd.f32 1.0, %v2690_v60 }
 0x21f   :  { %v2692_v12 = vpop.eup %2691 }
 0x220   :  { %2705 = vrcp.f32 %v1640_v47  ;;  %v1641_v31 = vadd.f32 1.0, %v2692_v12 }
 0x221   :  { %v2694_v5 = vpop.eup %2693  ;;  %v1877_v25 = vpop.f32.mrf.mxu1 }
 0x222   :  { %2707 = vrcp.f32 %v1641_v31  ;;  %v1644_v53 = vadd.f32 1.0, %v2694_v5 }
 0x223   :  { %v2696_v42 = vpop.eup %2695 }
 0x224   :  { %2709 = vrcp.f32 %v1644_v53  ;;  %v1645_v38 = vadd.f32 1.0, %v2696_v42 }
 0x225   :  { %v2698_v63 = vpop.eup %2697 }
 0x226   :  { %v1696_v49 = vmul.f32 %v2698_v63, %v1680_v45  ;;  %2711 = vrcp.f32 %v1645_v38 }
 0x227   :  { %v2700_v4 = vpop.eup %2699 }
 0x228   :  { %v3921_v6 = vadd.f32 %v1696_v49, %v3778_v59  ;;  %v1697_v58 = vmul.f32 %v2700_v4, %v1681_v40 }
 0x229   :  { %v2702_v24 = vpop.eup %2701 }
 0x22a   :  { %2132 = vst [vmem:[#allocation8 + $0x10] sm:$0xff] %v3921_v6  ;;  %v3928_v39 = vadd.f32 %v1697_v58, %v3780_v36  ;;  %v1700_v52 = vmul.f32 %v2702_v24, %v1684_v9 }
 0x22b   :  { %v2704_v35 = vpop.eup %2703 }
 0x22c   :  { %2133 = vst [vmem:[#allocation8 + $0x18] sm:$0xff] %v3928_v39  ;;  %v3935_v59 = vadd.f32 %v1700_v52, %v3782_v61  ;;  %v1701_v0 = vmul.f32 %v2704_v35, %v1685_v32 }
 0x22d   :  { %v2706_v30 = vpop.eup %2705 }
 0x22e   :  { %2136 = vst [vmem:[#allocation8 + $0x30] sm:$0xff] %v3935_v59  ;;  %v3942_v36 = vadd.f32 %v1701_v0, %v3784_v46  ;;  %v1704_v3 = vmul.f32 %v2706_v30, %v1688_v8 }
 0x22f   :  { %v2708_v1 = vpop.eup %2707 }
 0x230   :  { %2137 = vst [vmem:[#allocation8 + $0x38] sm:$0xff] %v3942_v36  ;;  %v3949_v61 = vadd.f32 %v1704_v3, %v3786_v48  ;;  %v1705_v44 = vmul.f32 %v2708_v1, %v1689_v37 }
 0x231   :  { %v2710_v10 = vpop.eup %2709 }
 0x232   :  { %2140 = vst [vmem:[#allocation8 + $0x50] sm:$0xff] %v3949_v61  ;;  %v3956_v46 = vadd.f32 %v1705_v44, %v3788_v56  ;;  %v1708_v21 = vmul.f32 %v2710_v10, %v1692_v7  ;;  %v1879_v56 = vpop.f32.mrf.mxu1 }
 0x233   :  { %v2712_v43 = vpop.eup %2711 }
 0x234   :  { %2141 = vst [vmem:[#allocation8 + $0x58] sm:$0xff] %v3956_v46  ;;  %v3960_v48 = vadd.f32 %v1708_v21, %v3790_v34  ;;  %v1709_v20 = vmul.f32 %v2712_v43, %v1693_v13 }
 0x236   :  { %2144 = vst [vmem:[#allocation8 + $0x70] sm:$0xff] %v3960_v48  ;;  %v3964_v11 = vadd.f32 %v1709_v20, %v3792_v55 }
 0x238   :  { %2145 = vst [vmem:[#allocation8 + $0x78] sm:$0xff] %v3964_v11 }
 0x239   :  { %2931 = shalt.err (!%p2928_p0)
}
 0x23a   :  { %s2976_s15 = smov 512   ;;  %s2977_s16 = smov 32   ;;  %v1881_v34 = vpop.f32.mrf.mxu1  ;;  %v3973_v55 = vpop.permute.xlu0 %1740 }
 0x23b   :  { %2185 = dma.vmem_to_hbm [thread:$0]  %s2180_s14, 2048, %s4024_s5, [#allocation9], %s2976_s15, %s2976_s15, %s2977_s16   ;;  %v3976_v2 = vpop.permute.xlu1 %1745 }
 0x23c   :  { %v1883_v62 = vpop.f32.mrf.mxu1  ;;  %s2978_s5 = smov [#allocation7]  }
 0x23d   :  { %s2167_s19 = sshll.u32 %s2978_s5, 4  ;;  %s2168_s19 = int_to_ptr.vmem [resolvable:$true] %s2167_s19 }
 0x23e   :  { %v1887_v57 = vpop.f32.mrf.mxu1  ;;  %v3980_v60 = vpop.permute.xlu0 %1750  ;;  %s2940_s20 = scalar_lea.vmem %s2168_s19, 2048  ;;  %p2945_p2 = scmp.lt.s32.totalorder %s2168_s19, %s2168_s19 }
 0x23f   :  { %v3984_v40 = vpop.permute.xlu1 %1755  ;;  %p2941_p1 = scmp.ne.s32.totalorder %s2168_s19, %s2940_s20  ;;  %p2946_p3 = scmp.lt.s32.totalorder %s2940_s20, %s2940_s20 }
 0x240   :  { %v1824_v22 = vpop.f32.mrf.mxu0  ;;  %v1889_v12 = vpop.f32.mrf.mxu1 }
 0x241   :  { %v1825_v14 = vadd.f32 %v1824_v22, %v3973_v55  ;;  %p2947_p4 = por %p2946_p3, %p2945_p2 }
 0x242   :  { %v1826_v19 = vpop.f32.mrf.mxu0  ;;  %v1891_v4 = vpop.f32.mrf.mxu1 }
 0x243   :  { %v1878_v17 = vadd.f32 %v1877_v25, %v1825_v14  ;;  %v1827_v29 = vadd.f32 %v1826_v19, %v3973_v55  ;;  %p2948_p5 = pnand %p2947_p4, %p2941_p1 }
 0x244   :  { %v1828_v50 = vpop.f32.mrf.mxu0  ;;  %v1893_v30 = vpop.f32.mrf.mxu1 }
 0x245   :  { %v2348_v33 = vmul.f32 -1.442695, %v1878_v17  ;;  %v1880_v26 = vadd.f32 %v1879_v56, %v1827_v29  ;;  %v1829_v51 = vadd.f32 %v1828_v50, %v3976_v2 }
 0x246   :  { %v1830_v47 = vpop.f32.mrf.mxu0 }
 0x247   :  { %2713 = vpow2.f32 %v2348_v33  ;;  %v2349_v31 = vmul.f32 -1.442695, %v1880_v26  ;;  %v1882_v5 = vadd.f32 %v1881_v34, %v1829_v51  ;;  %v1831_v53 = vadd.f32 %v1830_v47, %v3976_v2 }
 0x248   :  { %v1834_v42 = vpop.f32.mrf.mxu0 }
 0x249   :  { %2715 = vpow2.f32 %v2349_v31  ;;  %v2352_v45 = vmul.f32 -1.442695, %v1882_v5  ;;  %v1884_v38 = vadd.f32 %v1883_v62, %v1831_v53  ;;  %v1835_v63 = vadd.f32 %v1834_v42, %v3980_v60 }
 0x24a   :  { %v1836_v49 = vpop.f32.mrf.mxu0 }
 0x24b   :  { %2717 = vpow2.f32 %v2352_v45  ;;  %v2353_v9 = vmul.f32 -1.442695, %v1884_v38  ;;  %v1837_v58 = vadd.f32 %v1836_v49, %v3980_v60  ;;  %v1888_v24 = vadd.f32 %v1887_v57, %v1835_v63 }
 0x24c   :  { %v1838_v32 = vpop.f32.mrf.mxu0 }
 0x24d   :  { %2719 = vpow2.f32 %v2353_v9  ;;  %v2356_v52 = vmul.f32 -1.442695, %v1888_v24  ;;  %v1839_v35 = vadd.f32 %v1838_v32, %v3984_v40  ;;  %v1890_v8 = vadd.f32 %v1889_v12, %v1837_v58 }
 0x24e   :  { %v1840_v0 = vpop.f32.mrf.mxu0 }
 0x24f   :  { %2721 = vpow2.f32 %v2356_v52  ;;  %v2357_v37 = vmul.f32 -1.442695, %v1890_v8  ;;  %v1841_v3 = vadd.f32 %v1840_v0, %v3984_v40  ;;  %v1892_v1 = vadd.f32 %v1891_v4, %v1839_v35 }
 0x251   :  { %2723 = vpow2.f32 %v2357_v37  ;;  %v2360_v7 = vmul.f32 -1.442695, %v1892_v1  ;;  %v1894_v44 = vadd.f32 %v1893_v30, %v1841_v3 }
 0x253   :  { %2725 = vpow2.f32 %v2360_v7  ;;  %v2361_v10 = vmul.f32 -1.442695, %v1894_v44 }
 0x254   :  { %v2714_v13 = vpop.eup %2713 }
 0x255   :  { %v2050_v21 = vadd.f32 1.0, %v2714_v13  ;;  %2727 = vpow2.f32 %v2361_v10 }
 0x256   :  { %v2716_v43 = vpop.eup %2715  ;;  %2729 = vtanh.f32 %v3862_v18 }
 0x257   :  { %2731 = vrcp.f32 %v2050_v21  ;;  %v2051_v20 = vadd.f32 1.0, %v2716_v43 }
 0x258   :  { %v2718_v25 = vpop.eup %2717  ;;  %2733 = vtanh.f32 %v3870_v27 }
 0x259   :  { %2735 = vrcp.f32 %v2051_v20  ;;  %v2054_v56 = vadd.f32 1.0, %v2718_v25 }
 0x25a   :  { %v2720_v34 = vpop.eup %2719  ;;  %2737 = vtanh.f32 %v3878_v23 }
 0x25b   :  { %2739 = vrcp.f32 %v2054_v56  ;;  %v2055_v62 = vadd.f32 1.0, %v2720_v34 }
 0x25c   :  { %v2722_v22 = vpop.eup %2721  ;;  %2741 = vtanh.f32 %v3886_v28 }
 0x25d   :  { %2743 = vrcp.f32 %v2055_v62  ;;  %v2058_v14 = vadd.f32 1.0, %v2722_v22 }
 0x25e   :  { %v2724_v19 = vpop.eup %2723  ;;  %2745 = vtanh.f32 %v3894_v41 }
 0x25f   :  { %2747 = vrcp.f32 %v2058_v14  ;;  %v2059_v18 = vadd.f32 1.0, %v2724_v19 }
 0x260   :  { %v2726_v57 = vpop.eup %2725  ;;  %2749 = vtanh.f32 %v3902_v54  ;;  %v1983_v17 = vpop.f32.mrf.mxu0 }
 0x261   :  { %v1930_v27 = vpop.f32.mrf.mxu1  ;;  %2751 = vrcp.f32 %v2059_v18  ;;  %v2062_v29 = vadd.f32 1.0, %v2726_v57 }
 0x262   :  { %v1931_v23 = vadd.f32 %v1930_v27, %v3973_v55  ;;  %v2728_v50 = vpop.eup %2727  ;;  %2753 = vtanh.f32 %v3905_v15  ;;  %v1985_v33 = vpop.f32.mrf.mxu0 }
 0x263   :  { %v1932_v28 = vpop.f32.mrf.mxu1  ;;  %v2730_v26 = vpop.eup %2729  ;;  %2755 = vrcp.f32 %v2062_v29  ;;  %v2063_v51 = vadd.f32 1.0, %v2728_v50 }
 0x264   :  { %v1984_v41 = vadd.f32 %v1983_v17, %v1931_v23  ;;  %v1933_v47 = vadd.f32 %v1932_v28, %v3973_v55  ;;  %v2732_v12 = vpop.eup %2731  ;;  %2757 = vtanh.f32 %v3908_v16  ;;  %v1987_v31 = vpop.f32.mrf.mxu0 }
 0x265   :  { %v1934_v54 = vpop.f32.mrf.mxu1  ;;  %v2734_v5 = vpop.eup %2733  ;;  %v2114_v53 = vmul.f32 %v2732_v12, %v2730_v26  ;;  %2759 = vrcp.f32 %v2063_v51 }
 0x266   :  { %v2350_v42 = vmul.f32 -1.442695, %v1984_v41  ;;  %v1986_v45 = vadd.f32 %v1985_v33, %v1933_v47  ;;  %v2736_v38 = vpop.eup %2735  ;;  %v1935_v15 = vadd.f32 %v1934_v54, %v3976_v2  ;;  %v1989_v49 = vpop.f32.mrf.mxu0 }
 0x267   :  { %v1936_v63 = vpop.f32.mrf.mxu1  ;;  %v2738_v4 = vpop.eup %2737  ;;  %2146 = vst [vmem:[#allocation7] sm:$0xff] %v2114_v53  ;;  %v2115_v9 = vmul.f32 %v2736_v38, %v2734_v5 }
 0x268   :  { %2761 = vpow2.f32 %v2350_v42  ;;  %v2351_v55 = vmul.f32 -1.442695, %v1986_v45  ;;  %v1937_v58 = vadd.f32 %v1936_v63, %v3976_v2  ;;  %v2740_v16 = vpop.eup %2739  ;;  %v1988_v24 = vadd.f32 %v1987_v31, %v1935_v15  ;;  %v1993_v52 = vpop.f32.mrf.mxu0 }
 0x269   :  { %v1940_v32 = vpop.f32.mrf.mxu1  ;;  %v2742_v35 = vpop.eup %2741  ;;  %2147 = vst [vmem:[#allocation7 + $0x8] sm:$0xff] %v2115_v9  ;;  %v2118_v8 = vmul.f32 %v2740_v16, %v2738_v4 }
 0x26a   :  { %2763 = vpow2.f32 %v2351_v55  ;;  %v1990_v0 = vadd.f32 %v1989_v49, %v1937_v58  ;;  %v1941_v30 = vadd.f32 %v1940_v32, %v3980_v60  ;;  %v2744_v37 = vpop.eup %2743  ;;  %v2354_v3 = vmul.f32 -1.442695, %v1988_v24  ;;  %v1995_v7 = vpop.f32.mrf.mxu0 }
 0x26b   :  { %v1942_v1 = vpop.f32.mrf.mxu1  ;;  %v2746_v44 = vpop.eup %2745  ;;  %2150 = vst [vmem:[#allocation7 + $0x20] sm:$0xff] %v2118_v8  ;;  %v2119_v10 = vmul.f32 %v2744_v37, %v2742_v35 }
 0x26c   :  { %v2355_v13 = vmul.f32 -1.442695, %v1990_v0  ;;  %v1994_v2 = vadd.f32 %v1993_v52, %v1941_v30  ;;  %v1943_v21 = vadd.f32 %v1942_v1, %v3980_v60  ;;  %v2748_v43 = vpop.eup %2747  ;;  %2765 = vpow2.f32 %v2354_v3  ;;  %v1997_v25 = vpop.f32.mrf.mxu0 }
 0x26d   :  { %v1944_v20 = vpop.f32.mrf.mxu1  ;;  %v2750_v56 = vpop.eup %2749  ;;  %2151 = vst [vmem:[#allocation7 + $0x28] sm:$0xff] %v2119_v10  ;;  %v2122_v34 = vmul.f32 %v2748_v43, %v2746_v44 }
 0x26e   :  { %2767 = vpow2.f32 %v2355_v13  ;;  %v2358_v62 = vmul.f32 -1.442695, %v1994_v2  ;;  %v1996_v22 = vadd.f32 %v1995_v7, %v1943_v21  ;;  %v2752_v14 = vpop.eup %2751  ;;  %v1945_v19 = vadd.f32 %v1944_v20, %v3984_v40  ;;  %v1999_v50 = vpop.f32.mrf.mxu0 }
 0x26f   :  { %v1946_v18 = vpop.f32.mrf.mxu1  ;;  %v2754_v57 = vpop.eup %2753  ;;  %2154 = vst [vmem:[#allocation7 + $0x40] sm:$0xff] %v2122_v34  ;;  %v2123_v27 = vmul.f32 %v2752_v14, %v2750_v56 }
 0x270   :  { %2769 = vpow2.f32 %v2358_v62  ;;  %v2359_v17 = vmul.f32 -1.442695, %v1996_v22  ;;  %v1947_v60 = vadd.f32 %v1946_v18, %v3984_v40  ;;  %v2756_v29 = vpop.eup %2755  ;;  %v1998_v23 = vadd.f32 %v1997_v25, %v1945_v19 }
 0x271   :  { %v2758_v28 = vpop.eup %2757  ;;  %2155 = vst [vmem:[#allocation7 + $0x48] sm:$0xff] %v2123_v27  ;;  %v2126_v33 = vmul.f32 %v2756_v29, %v2754_v57 }
 0x272   :  { %2771 = vpow2.f32 %v2359_v17  ;;  %v2000_v26 = vadd.f32 %v1999_v50, %v1947_v60  ;;  %v2760_v51 = vpop.eup %2759  ;;  %v2362_v41 = vmul.f32 -1.442695, %v1998_v23 }
 0x273   :  { %2158 = vst [vmem:[#allocation7 + $0x60] sm:$0xff] %v2126_v33  ;;  %v2127_v47 = vmul.f32 %v2760_v51, %v2758_v28 }
 0x274   :  { %v2363_v12 = vmul.f32 -1.442695, %v2000_v26  ;;  %2773 = vpow2.f32 %v2362_v41 }
 0x275   :  { %v2762_v54 = vpop.eup %2761  ;;  %2159 = vst [vmem:[#allocation7 + $0x68] sm:$0xff] %v2127_v47 }
 0x276   :  { %v2052_v31 = vadd.f32 1.0, %v2762_v54  ;;  %2775 = vpow2.f32 %v2363_v12 }
 0x277   :  { %v2764_v5 = vpop.eup %2763  ;;  %2777 = vtanh.f32 %v3921_v6 }
 0x278   :  { %2779 = vrcp.f32 %v2052_v31  ;;  %v2053_v40 = vadd.f32 1.0, %v2764_v5 }
 0x279   :  { %2781 = vtanh.f32 %v3928_v39  ;;  %v2766_v53 = vpop.eup %2765 }
 0x27a   :  { %2783 = vrcp.f32 %v2053_v40  ;;  %v2056_v45 = vadd.f32 1.0, %v2766_v53 }
 0x27b   :  { %v2768_v42 = vpop.eup %2767  ;;  %2785 = vtanh.f32 %v3935_v59 }
 0x27c   :  { %2787 = vtanh.f32 %v3942_v36  ;;  %v2057_v38 = vadd.f32 1.0, %v2768_v42 }
 0x27d   :  { %v2770_v15 = vpop.eup %2769  ;;  %2789 = vrcp.f32 %v2056_v45 }
 0x27e   :  { %2791 = vrcp.f32 %v2057_v38  ;;  %v2060_v63 = vadd.f32 1.0, %v2770_v15 }
 0x27f   :  { %v2772_v49 = vpop.eup %2771  ;;  %2793 = vtanh.f32 %v3949_v61 }
 0x280   :  { %2795 = vrcp.f32 %v2060_v63  ;;  %v2061_v6 = vadd.f32 1.0, %v2772_v49 }
 0x281   :  { %2797 = vtanh.f32 %v3956_v46  ;;  %v2774_v39 = vpop.eup %2773 }
 0x282   :  { %2799 = vrcp.f32 %v2061_v6  ;;  %v2064_v59 = vadd.f32 1.0, %v2774_v39 }
 0x283   :  { %v2776_v4 = vpop.eup %2775  ;;  %2801 = vtanh.f32 %v3960_v48 }
 0x284   :  { %v2778_v9 = vpop.eup %2777  ;;  %2803 = vtanh.f32 %v3964_v11  ;;  %v2065_v36 = vadd.f32 1.0, %v2776_v4 }
 0x285   :  { %v2780_v55 = vpop.eup %2779  ;;  %2805 = vrcp.f32 %v2064_v59 }
 0x286   :  { %v2782_v58 = vpop.eup %2781  ;;  %v2116_v16 = vmul.f32 %v2780_v55, %v2778_v9  ;;  %2807 = vrcp.f32 %v2065_v36 }
 0x287   :  { %v2784_v61 = vpop.eup %2783 }
 0x288   :  { %v2786_v24 = vpop.eup %2785  ;;  %2148 = vst [vmem:[#allocation7 + $0x10] sm:$0xff] %v2116_v16  ;;  %v2117_v32 = vmul.f32 %v2784_v61, %v2782_v58 }
 0x289   :  { %v2788_v46 = vpop.eup %2787 }
 0x28a   :  { %v2790_v52 = vpop.eup %2789  ;;  %2149 = vst [vmem:[#allocation7 + $0x18] sm:$0xff] %v2117_v32 }
 0x28b   :  { %v2792_v35 = vpop.eup %2791  ;;  %v2120_v8 = vmul.f32 %v2790_v52, %v2786_v24 }
 0x28c   :  { %v2794_v48 = vpop.eup %2793  ;;  %v2121_v0 = vmul.f32 %v2792_v35, %v2788_v46 }
 0x28d   :  { %v2796_v30 = vpop.eup %2795  ;;  %2152 = vst [vmem:[#allocation7 + $0x30] sm:$0xff] %v2120_v8 }
 0x28e   :  { %v2798_v11 = vpop.eup %2797  ;;  %2153 = vst [vmem:[#allocation7 + $0x38] sm:$0xff] %v2121_v0  ;;  %v2124_v37 = vmul.f32 %v2796_v30, %v2794_v48 }
 0x28f   :  { %v2800_v3 = vpop.eup %2799 }
 0x290   :  { %v2802_v1 = vpop.eup %2801  ;;  %2156 = vst [vmem:[#allocation7 + $0x50] sm:$0xff] %v2124_v37  ;;  %v2125_v7 = vmul.f32 %v2800_v3, %v2798_v11 }
 0x291   :  { %v2804_v44 = vpop.eup %2803 }
 0x292   :  { %v2806_v10 = vpop.eup %2805  ;;  %2157 = vst [vmem:[#allocation7 + $0x58] sm:$0xff] %v2125_v7 }
 0x293   :  { %v2808_v13 = vpop.eup %2807  ;;  %v2128_v2 = vmul.f32 %v2806_v10, %v2802_v1 }
 0x294   :  { %v2129_v21 = vmul.f32 %v2808_v13, %v2804_v44 }
 0x295   :  { %2160 = vst [vmem:[#allocation7 + $0x70] sm:$0xff] %v2128_v2 }
 0x296   :  { %2161 = vst [vmem:[#allocation7 + $0x78] sm:$0xff] %v2129_v21 }
 0x297   :  { %2951 = shalt.err (!%p2948_p5)
}
 0x298   :  { %2173 = dma.vmem_to_hbm [thread:$0]  %s2168_s19, 2048, %s4023_s4, [#allocation4], %s2976_s15, %s2976_s15, %s2977_s16  }
 0x299   :  { %2964 = dma.done.wait [#allocation4], 2048  }
 0x29a   :  { %2965 = vsyncadd [#allocation4], 4294965248 }
 0x29b   :  { %2966 = dma.done.wait [#allocation9], 2048  }
 0x29c   :  { %2967 = vsyncadd [#allocation9], 4294965248 }
 0x29d   :  { %2192 = vsyncpa [#allocation3], 1 }
 0x29e   :  { %2193 = vsyncpa [#allocation6], 1 }
 0x29f   :  { %2194 = vsyncpa [#allocation4], 1 }
 0x2a0   :  { %2195 = vsyncpa [#allocation9], 1 }

</bundles_post_ra>
